<compile_context>
chip_gen: v7x
topology: tpu7x:2x2x1
jax: 0.10.0
libtpu: 0.0.40
codegen_flags: <defaults>
</compile_context>

<pallas_src>
import jax
import jax.numpy as jnp
from jax.experimental import pallas as pl
from jax.experimental.pallas import tpu as pltpu
import numpy as np


def _choose_block_batch(B, N, target_rows=512):
    """How many batch elements to fuse into one grid step.

    Fuse as many batch rows as fit `target_rows` so projection matmuls see a
    tall M.  Keep >=2 grid steps (only useful for 2-TC megacore sharding)
    only when each step still has >=128 rows; otherwise a single big step
    wins on every chip (per-step overhead ~0.35us dominates tiny slabs, and
    dimension_semantics="parallel" has no effect on single-TC v5e/v6e).
    """
    block_b = max(1, min(B, target_rows // max(N, 1)))
    if block_b < B and block_b * N < 128:
        block_b = B  # fuse everything -> grid=(1,)
    # (8,128) rule: a partial block's sublane dim must be divisible by 8.
    if block_b < B and (block_b * N) % 8 != 0:
        block_b = B  # single full-array block is always legal
    return block_b


def make_alt_attention_kernel(block_b, N, C, num_heads, scale, compute_dtype):
    head_dim = C // num_heads
    rows = block_b * N

    def kernel(x_ref, wqkv_ref, wproj_ref, bproj_ref, o_ref):
        x = x_ref[...]                                  # (rows, C)   compute_dtype
        wqkv = wqkv_ref[...]                            # (C, 3C)     compute_dtype
        bproj = bproj_ref[...]                          # (1, C)      float32

        # Fused QKV projection (qkv_bias=False in the module defaults),
        # f32 accumulation on the MXU.
        qkv = jnp.dot(x, wqkv, preferred_element_type=jnp.float32)   # (rows, 3C) f32
        q = (qkv[:, 0 * C:1 * C] * scale).reshape(block_b, N, C)
        k = qkv[:, 1 * C:2 * C].reshape(block_b, N, C)
        v = qkv[:, 2 * C:3 * C].reshape(block_b, N, C)

        # Per-head attention with the output projection folded in:
        #     y = sum_h softmax(q_h @ k_h^T) @ v_h @ Wproj[h]   (+ bias)
        # -> no per-head masked column stores, no VMEM accumulator round-trip;
        # the only store is one full-width (rows, C) write below.
        # num_heads is small & static, so a Python unroll is fine; the f32
        # accumulator `y` chains the iterations so per-head score tiles are
        # consumed immediately instead of all staying live.
        # (Convert to lax.fori_loop / a grid axis over heads if N grows large.)
        y = jnp.zeros((rows, C), jnp.float32)
        for h in range(num_heads):
            lo = h * head_dim
            hi = lo + head_dim
            q_h = q[:, :, lo:hi].astype(compute_dtype)          # (b, N, hd)
            k_h = k[:, :, lo:hi].astype(compute_dtype)
            v_h = v[:, :, lo:hi].astype(compute_dtype)

            # scores = (q * scale) @ k^T, float32 softmax (matches torch).
            s = jnp.einsum('bqd,bkd->bqk', q_h, k_h,
                           preferred_element_type=jnp.float32)   # (b, N, N) f32
            s = s - jnp.max(s, axis=-1, keepdims=True)
            p = jnp.exp(s)
            # Exact divide: kernel is not VALU-bound here, and it keeps
            # bit-parity with the PyTorch softmax (review correctness note).
            p = p / jnp.sum(p, axis=-1, keepdims=True)

            o_h = jnp.einsum('bqk,bkd->bqd', p.astype(compute_dtype), v_h,
                             preferred_element_type=jnp.float32)  # (b, N, hd) f32

            w_h = wproj_ref[h]                                    # (hd, C), static index
            y = y + jnp.dot(o_h.reshape(rows, head_dim).astype(compute_dtype),
                            w_h, preferred_element_type=jnp.float32)

        # Single full-width store (+ bias, broadcast hoisted out of the loop).
        o_ref[...] = (y + bproj).astype(o_ref.dtype)

    return kernel


def prepare_alt_attention_params(w_qkv, w_proj, b_proj, num_heads,
                                 compute_dtype=jnp.bfloat16):
    """One-time parameter prep — do this OUTSIDE the per-call / jitted path.

    * Transposes torch-layout weights so the kernel computes plain x @ W
      (avoids a per-call O(C*3C) HBM transpose).
    * Regroups the output-projection weight by head -> (H, hd, C) so the
      kernel folds the projection into the head loop with a static index.
    * Casts weights to the MXU compute dtype (bf16 by default); bias stays f32.
    """
    C = w_proj.shape[0]
    head_dim = C // num_heads
    wqkv_t = jnp.asarray(w_qkv).T.astype(compute_dtype)                    # (C, 3C)
    wproj_h = (jnp.asarray(w_proj).T
               .reshape(C // head_dim, head_dim, C)
               .astype(compute_dtype))                                     # (H, hd, C)
    bproj_2d = jnp.asarray(b_proj).reshape(1, C).astype(jnp.float32)       # (1, C)
    return wqkv_t, wproj_h, bproj_2d


def alt_attention(x, wqkv_t, wproj_h, bproj_2d, num_heads,
                  compute_dtype=jnp.bfloat16, target_rows=512):
    """x: (B, N, C).  Weights must come from prepare_alt_attention_params()."""
    B, N, C = x.shape
    head_dim = C // num_heads
    scale = head_dim ** (-0.5)
    out_dtype = x.dtype

    block_b = _choose_block_batch(B, N, target_rows)
    rows = block_b * N
    num_blocks = pl.cdiv(B, block_b)
    total_rows = num_blocks * rows

    # Flatten batch into rows (free, contiguous reshape); cast activations to
    # the MXU compute dtype once in the wrapper (halves HBM+VMEM traffic for x
    # when bf16).  Ragged B is padded with zero rows and sliced off below.
    x2d = x.reshape(B * N, C).astype(compute_dtype)
    if total_rows != B * N:
        x2d = jnp.pad(x2d, ((0, total_rows - B * N), (0, 0)))

    kernel = make_alt_attention_kernel(block_b, N, C, num_heads, scale, compute_dtype)

    # Advisory cost estimate so XLA can schedule surrounding ops around the call.
    flops = (2 * B * N * C * 3 * C                       # QKV projection
             + 4 * B * num_heads * N * N * head_dim      # scores + P@V
             + 2 * B * N * C * C)                        # output projection
    bytes_accessed = (x2d.size * x2d.dtype.itemsize
                      + wqkv_t.size * wqkv_t.dtype.itemsize
                      + wproj_h.size * wproj_h.dtype.itemsize
                      + bproj_2d.size * bproj_2d.dtype.itemsize
                      + B * N * C * jnp.dtype(out_dtype).itemsize)
    cost = pl.CostEstimate(flops=int(flops),
                           transcendentals=int(B * num_heads * N * N),
                           bytes_accessed=int(bytes_accessed))

    # Explicit scoped-VMEM budget (matters on v7x: 64 MiB physical / 32 MiB
    # default scoped):  ~2x (x slab + out slab) double buffers + 2x weights
    # + headroom for the in-kernel f32 intermediates.
    itemsize_c = jnp.dtype(compute_dtype).itemsize
    step_bytes = (2 * rows * C * (itemsize_c + jnp.dtype(out_dtype).itemsize)
                  + 2 * (wqkv_t.size + wproj_h.size) * itemsize_c + 2 * C * 4
                  + 4 * rows * 3 * C * 4)
    vmem_limit = int(min(max(4 * step_bytes, 32 * 1024 * 1024), 64 * 1024 * 1024))

    out2d = pl.pallas_call(
        kernel,
        out_shape=jax.ShapeDtypeStruct((total_rows, C), out_dtype),
        grid_spec=pltpu.PrefetchScalarGridSpec(
            num_scalar_prefetch=0,
            grid=(num_blocks,),
            in_specs=[
                pl.BlockSpec((rows, C), lambda i: (i, 0)),              # x rows slab
                # Weights/bias are grid-invariant (index_map -> 0) so they stay
                # VMEM-resident across grid steps.
                # TODO(synk): mark these pipeline_mode=pl.Buffered(1) once
                # single-buffered invariant operands are supported on the
                # top-level pallas_call pipeline (saves 1x weight residency at
                # large C; irrelevant at C=32 / grid=(1,)).
                pl.BlockSpec((C, 3 * C), lambda i: (0, 0)),             # W_qkv^T
                pl.BlockSpec((num_heads, head_dim, C), lambda i: (0, 0, 0)),  # W_proj^T by head
                pl.BlockSpec((1, C), lambda i: (0, 0)),                 # b_proj (f32)
            ],
            out_specs=pl.BlockSpec((rows, C), lambda i: (i, 0)),
        ),
        compiler_params=pltpu.CompilerParams(
            dimension_semantics=("parallel",),
            vmem_limit_bytes=vmem_limit,
        ),
        cost_estimate=cost,
    )(x2d, wqkv_t, wproj_h, bproj_2d)

    return out2d[:B * N].reshape(B, N, C)


def alt_attention_ref(x, w_qkv, w_proj, b_proj, num_heads):
    """Pure-JAX reference mirroring the PyTorch forward (default args)."""
    B, N, C = x.shape
    head_dim = C // num_heads
    scale = head_dim ** (-0.5)
    qkv = x @ w_qkv.T                                          # (B, N, 3C)
    qkv = qkv.reshape(B, N, 3, num_heads, head_dim).transpose(2, 0, 3, 1, 4)
    q, k, v = qkv[0], qkv[1], qkv[2]                           # (B, H, N, hd)
    q = q * scale
    attn = jnp.einsum('bhnd,bhmd->bhnm', q, k)
    attn = jax.nn.softmax(attn.astype(jnp.float32), axis=-1).astype(x.dtype)
    out = jnp.einsum('bhnm,bhmd->bhnd', attn, v)
    out = out.transpose(0, 2, 1, 3).reshape(B, N, C)
    return out @ w_proj.T + b_proj


if __name__ == "__main__":
    # Small shapes consistent with the module: dim=32, num_heads=8 -> head_dim=4.
    B, N, C = 2, 8, 32
    num_heads = 8

    key = jax.random.PRNGKey(0)
    kx, kqkv, kproj, kb = jax.random.split(key, 4)

    x = jax.random.normal(kx, (B, N, C), dtype=jnp.float32)
    # Deterministic synthetic parameters (shapes from nn.Linear in __init__).
    w_qkv = jax.random.normal(kqkv, (3 * C, C), dtype=jnp.float32) * 0.05   # qkv_bias=False
    w_proj = jax.random.normal(kproj, (C, C), dtype=jnp.float32) * 0.05
    b_proj = jax.random.normal(kb, (C,), dtype=jnp.float32) * 0.05

    # TODO(synk): padding_mask / alibi_bias / cosine_attention branches not
    # implemented (module defaults None/None/False); dropout is identity at p=0.0.

    ref = alt_attention_ref(x, w_qkv, w_proj, b_proj, num_heads)

    # 1) Full-precision path (f32 matmul operands): tight check vs reference.
    params_f32 = prepare_alt_attention_params(w_qkv, w_proj, b_proj, num_heads,
                                              compute_dtype=jnp.float32)
    out_f32 = alt_attention(x, *params_f32, num_heads, compute_dtype=jnp.float32)
    out_f32 = jax.block_until_ready(out_f32)
    np.testing.assert_allclose(np.asarray(out_f32), np.asarray(ref),
                               rtol=2e-3, atol=1e-4)

    # 2) Default bf16 MXU path: looser tolerance for bf16 operand rounding
    #    (softmax and all accumulation remain f32).
    params_bf16 = prepare_alt_attention_params(w_qkv, w_proj, b_proj, num_heads,
                                               compute_dtype=jnp.bfloat16)
    out_bf16 = alt_attention(x, *params_bf16, num_heads, compute_dtype=jnp.bfloat16)
    out_bf16 = jax.block_until_ready(out_bf16)
    np.testing.assert_allclose(np.asarray(out_bf16), np.asarray(ref),
                               rtol=3e-2, atol=5e-3)

    print("KERNEL_OK")
</pallas_src>

<mosaic_0001>
module attributes {stable_mosaic.version = 11 : i64} {
  func.func @kernel(%arg0: i32, %arg1: memref<16x32xf32, #tpu.memory_space<vmem>>, %arg2: memref<32x96xf32, #tpu.memory_space<vmem>>, %arg3: memref<8x4x32xf32, #tpu.memory_space<vmem>>, %arg4: memref<1x32xf32, #tpu.memory_space<vmem>>, %arg5: memref<16x32xf32, #tpu.memory_space<vmem>>) attributes {dimension_semantics = [#tpu.dimension_semantics<parallel>], iteration_bounds = array<i64: 1>, scalar_prefetch = 0 : i64, scratch_operands = 0 : i64, tpu.core_type = #tpu.core_type<tc>, window_params = [{transform_indices = @transform_0, window_bounds = array<i64: 16, 32>}, {pipeline_mode = #tpu.pipeline_mode<synchronous>, transform_indices = @transform_1, window_bounds = array<i64: 32, 96>}, {pipeline_mode = #tpu.pipeline_mode<synchronous>, transform_indices = @transform_2, window_bounds = array<i64: 8, 4, 32>}, {pipeline_mode = #tpu.pipeline_mode<synchronous>, transform_indices = @transform_3, window_bounds = array<i64: 1, 32>}, {transform_indices = @transform_4, window_bounds = array<i64: 16, 32>}]} {
    %c0 = arith.constant 0 : index
    %c0_0 = arith.constant 0 : index
    %0 = vector.load %arg1[%c0, %c0_0] : memref<16x32xf32, #tpu.memory_space<vmem>>, vector<16x32xf32>
    %c0_1 = arith.constant 0 : index
    %c0_2 = arith.constant 0 : index
    %1 = vector.load %arg2[%c0_1, %c0_2] : memref<32x96xf32, #tpu.memory_space<vmem>>, vector<32x96xf32>
    %c0_3 = arith.constant 0 : index
    %c0_4 = arith.constant 0 : index
    %2 = vector.load %arg4[%c0_3, %c0_4] : memref<1x32xf32, #tpu.memory_space<vmem>>, vector<1x32xf32>
    %cst = arith.constant dense<0.000000e+00> : vector<16x96xf32>
    %3 = tpu.matmul %0, %1, %cst {dimension_numbers = #tpu.dot_dimension_numbers<[1], [0], [0], [1], [0, 0, 1, 1], [], []>} : vector<16x32xf32>, vector<32x96xf32>, vector<16x96xf32> -> vector<16x96xf32>
    %4 = vector.extract_strided_slice %3 {offsets = [0, 0], sizes = [16, 32], strides = [1, 1]} : vector<16x96xf32> to vector<16x32xf32>
    %cst_5 = arith.constant 5.000000e-01 : f32
    %5 = vector.broadcast %cst_5 : f32 to vector<16x32xf32>
    %6 = arith.mulf %4, %5 : vector<16x32xf32>
    %7 = vector.shape_cast %6 : vector<16x32xf32> to vector<2x8x32xf32>
    %8 = vector.extract_strided_slice %3 {offsets = [0, 32], sizes = [16, 32], strides = [1, 1]} : vector<16x96xf32> to vector<16x32xf32>
    %9 = vector.shape_cast %8 : vector<16x32xf32> to vector<2x8x32xf32>
    %10 = vector.extract_strided_slice %3 {offsets = [0, 64], sizes = [16, 32], strides = [1, 1]} : vector<16x96xf32> to vector<16x32xf32>
    %11 = vector.shape_cast %10 : vector<16x32xf32> to vector<2x8x32xf32>
    %cst_6 = arith.constant 0.000000e+00 : f32
    %12 = vector.broadcast %cst_6 : f32 to vector<16x32xf32>
    %13 = vector.extract_strided_slice %7 {offsets = [0, 0, 0], sizes = [2, 8, 4], strides = [1, 1, 1]} : vector<2x8x32xf32> to vector<2x8x4xf32>
    %14 = vector.extract_strided_slice %9 {offsets = [0, 0, 0], sizes = [2, 8, 4], strides = [1, 1, 1]} : vector<2x8x32xf32> to vector<2x8x4xf32>
    %15 = vector.extract_strided_slice %11 {offsets = [0, 0, 0], sizes = [2, 8, 4], strides = [1, 1, 1]} : vector<2x8x32xf32> to vector<2x8x4xf32>
    "tpu.trace_start"() <{level = 10 : i32, message = "bqd,bkd->bqk"}> : () -> ()
    %cst_7 = arith.constant dense<0.000000e+00> : vector<2x8x8xf32>
    %16 = tpu.matmul %13, %14, %cst_7 {dimension_numbers = #tpu.dot_dimension_numbers<[2], [2], [1], [1], [0, 0, 0, 1, 1, 1], [0], [0]>} : vector<2x8x4xf32>, vector<2x8x4xf32>, vector<2x8x8xf32> -> vector<2x8x8xf32>
    "tpu.trace_stop"() : () -> ()
    %cst_8 = arith.constant dense<0xFF800000> : vector<2x8xf32>
    %17 = vector.multi_reduction <maximumf>, %16, %cst_8 [2] : vector<2x8x8xf32> to vector<2x8xf32>
    %18 = vector.shape_cast %17 : vector<2x8xf32> to vector<2x8x1xf32>
    %19 = vector.broadcast %18 : vector<2x8x1xf32> to vector<2x8x8xf32>
    %20 = arith.subf %16, %19 : vector<2x8x8xf32>
    %21 = math.exp %20 : vector<2x8x8xf32>
    %cst_9 = arith.constant dense<0.000000e+00> : vector<2x8xf32>
    %22 = vector.multi_reduction <add>, %21, %cst_9 [2] : vector<2x8x8xf32> to vector<2x8xf32>
    %23 = vector.shape_cast %22 : vector<2x8xf32> to vector<2x8x1xf32>
    %24 = vector.broadcast %23 : vector<2x8x1xf32> to vector<2x8x8xf32>
    %25 = arith.divf %21, %24 : vector<2x8x8xf32>
    "tpu.trace_start"() <{level = 10 : i32, message = "bqk,bkd->bqd"}> : () -> ()
    %cst_10 = arith.constant dense<0.000000e+00> : vector<2x8x4xf32>
    %26 = tpu.matmul %25, %15, %cst_10 {dimension_numbers = #tpu.dot_dimension_numbers<[2], [1], [1], [2], [0, 0, 0, 1, 1, 2], [0], [0]>} : vector<2x8x8xf32>, vector<2x8x4xf32>, vector<2x8x4xf32> -> vector<2x8x4xf32>
    "tpu.trace_stop"() : () -> ()
    %c0_11 = arith.constant 0 : index
    %c0_12 = arith.constant 0 : index
    %c0_13 = arith.constant 0 : index
    %27 = vector.load %arg3[%c0_11, %c0_12, %c0_13] : memref<8x4x32xf32, #tpu.memory_space<vmem>>, vector<1x4x32xf32>
    %28 = vector.shape_cast %27 : vector<1x4x32xf32> to vector<4x32xf32>
    %29 = vector.shape_cast %26 : vector<2x8x4xf32> to vector<16x4xf32>
    %cst_14 = arith.constant dense<0.000000e+00> : vector<16x32xf32>
    %30 = tpu.matmul %29, %28, %cst_14 {dimension_numbers = #tpu.dot_dimension_numbers<[1], [0], [0], [1], [0, 0, 1, 1], [], []>} : vector<16x4xf32>, vector<4x32xf32>, vector<16x32xf32> -> vector<16x32xf32>
    %31 = arith.addf %12, %30 : vector<16x32xf32>
    %32 = vector.extract_strided_slice %7 {offsets = [0, 0, 4], sizes = [2, 8, 4], strides = [1, 1, 1]} : vector<2x8x32xf32> to vector<2x8x4xf32>
    %33 = vector.extract_strided_slice %9 {offsets = [0, 0, 4], sizes = [2, 8, 4], strides = [1, 1, 1]} : vector<2x8x32xf32> to vector<2x8x4xf32>
    %34 = vector.extract_strided_slice %11 {offsets = [0, 0, 4], sizes = [2, 8, 4], strides = [1, 1, 1]} : vector<2x8x32xf32> to vector<2x8x4xf32>
    "tpu.trace_start"() <{level = 10 : i32, message = "bqd,bkd->bqk"}> : () -> ()
    %cst_15 = arith.constant dense<0.000000e+00> : vector<2x8x8xf32>
    %35 = tpu.matmul %32, %33, %cst_15 {dimension_numbers = #tpu.dot_dimension_numbers<[2], [2], [1], [1], [0, 0, 0, 1, 1, 1], [0], [0]>} : vector<2x8x4xf32>, vector<2x8x4xf32>, vector<2x8x8xf32> -> vector<2x8x8xf32>
    "tpu.trace_stop"() : () -> ()
    %cst_16 = arith.constant dense<0xFF800000> : vector<2x8xf32>
    %36 = vector.multi_reduction <maximumf>, %35, %cst_16 [2] : vector<2x8x8xf32> to vector<2x8xf32>
    %37 = vector.shape_cast %36 : vector<2x8xf32> to vector<2x8x1xf32>
    %38 = vector.broadcast %37 : vector<2x8x1xf32> to vector<2x8x8xf32>
    %39 = arith.subf %35, %38 : vector<2x8x8xf32>
    %40 = math.exp %39 : vector<2x8x8xf32>
    %cst_17 = arith.constant dense<0.000000e+00> : vector<2x8xf32>
    %41 = vector.multi_reduction <add>, %40, %cst_17 [2] : vector<2x8x8xf32> to vector<2x8xf32>
    %42 = vector.shape_cast %41 : vector<2x8xf32> to vector<2x8x1xf32>
    %43 = vector.broadcast %42 : vector<2x8x1xf32> to vector<2x8x8xf32>
    %44 = arith.divf %40, %43 : vector<2x8x8xf32>
    "tpu.trace_start"() <{level = 10 : i32, message = "bqk,bkd->bqd"}> : () -> ()
    %cst_18 = arith.constant dense<0.000000e+00> : vector<2x8x4xf32>
    %45 = tpu.matmul %44, %34, %cst_18 {dimension_numbers = #tpu.dot_dimension_numbers<[2], [1], [1], [2], [0, 0, 0, 1, 1, 2], [0], [0]>} : vector<2x8x8xf32>, vector<2x8x4xf32>, vector<2x8x4xf32> -> vector<2x8x4xf32>
    "tpu.trace_stop"() : () -> ()
    %c1 = arith.constant 1 : index
    %c0_19 = arith.constant 0 : index
    %c0_20 = arith.constant 0 : index
    %46 = vector.load %arg3[%c1, %c0_19, %c0_20] : memref<8x4x32xf32, #tpu.memory_space<vmem>>, vector<1x4x32xf32>
    %47 = vector.shape_cast %46 : vector<1x4x32xf32> to vector<4x32xf32>
    %48 = vector.shape_cast %45 : vector<2x8x4xf32> to vector<16x4xf32>
    %cst_21 = arith.constant dense<0.000000e+00> : vector<16x32xf32>
    %49 = tpu.matmul %48, %47, %cst_21 {dimension_numbers = #tpu.dot_dimension_numbers<[1], [0], [0], [1], [0, 0, 1, 1], [], []>} : vector<16x4xf32>, vector<4x32xf32>, vector<16x32xf32> -> vector<16x32xf32>
    %50 = arith.addf %31, %49 : vector<16x32xf32>
    %51 = vector.extract_strided_slice %7 {offsets = [0, 0, 8], sizes = [2, 8, 4], strides = [1, 1, 1]} : vector<2x8x32xf32> to vector<2x8x4xf32>
    %52 = vector.extract_strided_slice %9 {offsets = [0, 0, 8], sizes = [2, 8, 4], strides = [1, 1, 1]} : vector<2x8x32xf32> to vector<2x8x4xf32>
    %53 = vector.extract_strided_slice %11 {offsets = [0, 0, 8], sizes = [2, 8, 4], strides = [1, 1, 1]} : vector<2x8x32xf32> to vector<2x8x4xf32>
    "tpu.trace_start"() <{level = 10 : i32, message = "bqd,bkd->bqk"}> : () -> ()
    %cst_22 = arith.constant dense<0.000000e+00> : vector<2x8x8xf32>
    %54 = tpu.matmul %51, %52, %cst_22 {dimension_numbers = #tpu.dot_dimension_numbers<[2], [2], [1], [1], [0, 0, 0, 1, 1, 1], [0], [0]>} : vector<2x8x4xf32>, vector<2x8x4xf32>, vector<2x8x8xf32> -> vector<2x8x8xf32>
    "tpu.trace_stop"() : () -> ()
    %cst_23 = arith.constant dense<0xFF800000> : vector<2x8xf32>
    %55 = vector.multi_reduction <maximumf>, %54, %cst_23 [2] : vector<2x8x8xf32> to vector<2x8xf32>
    %56 = vector.shape_cast %55 : vector<2x8xf32> to vector<2x8x1xf32>
    %57 = vector.broadcast %56 : vector<2x8x1xf32> to vector<2x8x8xf32>
    %58 = arith.subf %54, %57 : vector<2x8x8xf32>
    %59 = math.exp %58 : vector<2x8x8xf32>
    %cst_24 = arith.constant dense<0.000000e+00> : vector<2x8xf32>
    %60 = vector.multi_reduction <add>, %59, %cst_24 [2] : vector<2x8x8xf32> to vector<2x8xf32>
    %61 = vector.shape_cast %60 : vector<2x8xf32> to vector<2x8x1xf32>
    %62 = vector.broadcast %61 : vector<2x8x1xf32> to vector<2x8x8xf32>
    %63 = arith.divf %59, %62 : vector<2x8x8xf32>
    "tpu.trace_start"() <{level = 10 : i32, message = "bqk,bkd->bqd"}> : () -> ()
    %cst_25 = arith.constant dense<0.000000e+00> : vector<2x8x4xf32>
    %64 = tpu.matmul %63, %53, %cst_25 {dimension_numbers = #tpu.dot_dimension_numbers<[2], [1], [1], [2], [0, 0, 0, 1, 1, 2], [0], [0]>} : vector<2x8x8xf32>, vector<2x8x4xf32>, vector<2x8x4xf32> -> vector<2x8x4xf32>
    "tpu.trace_stop"() : () -> ()
    %c2 = arith.constant 2 : index
    %c0_26 = arith.constant 0 : index
    %c0_27 = arith.constant 0 : index
    %65 = vector.load %arg3[%c2, %c0_26, %c0_27] : memref<8x4x32xf32, #tpu.memory_space<vmem>>, vector<1x4x32xf32>
    %66 = vector.shape_cast %65 : vector<1x4x32xf32> to vector<4x32xf32>
    %67 = vector.shape_cast %64 : vector<2x8x4xf32> to vector<16x4xf32>
    %cst_28 = arith.constant dense<0.000000e+00> : vector<16x32xf32>
    %68 = tpu.matmul %67, %66, %cst_28 {dimension_numbers = #tpu.dot_dimension_numbers<[1], [0], [0], [1], [0, 0, 1, 1], [], []>} : vector<16x4xf32>, vector<4x32xf32>, vector<16x32xf32> -> vector<16x32xf32>
    %69 = arith.addf %50, %68 : vector<16x32xf32>
    %70 = vector.extract_strided_slice %7 {offsets = [0, 0, 12], sizes = [2, 8, 4], strides = [1, 1, 1]} : vector<2x8x32xf32> to vector<2x8x4xf32>
    %71 = vector.extract_strided_slice %9 {offsets = [0, 0, 12], sizes = [2, 8, 4], strides = [1, 1, 1]} : vector<2x8x32xf32> to vector<2x8x4xf32>
    %72 = vector.extract_strided_slice %11 {offsets = [0, 0, 12], sizes = [2, 8, 4], strides = [1, 1, 1]} : vector<2x8x32xf32> to vector<2x8x4xf32>
    "tpu.trace_start"() <{level = 10 : i32, message = "bqd,bkd->bqk"}> : () -> ()
    %cst_29 = arith.constant dense<0.000000e+00> : vector<2x8x8xf32>
    %73 = tpu.matmul %70, %71, %cst_29 {dimension_numbers = #tpu.dot_dimension_numbers<[2], [2], [1], [1], [0, 0, 0, 1, 1, 1], [0], [0]>} : vector<2x8x4xf32>, vector<2x8x4xf32>, vector<2x8x8xf32> -> vector<2x8x8xf32>
    "tpu.trace_stop"() : () -> ()
    %cst_30 = arith.constant dense<0xFF800000> : vector<2x8xf32>
    %74 = vector.multi_reduction <maximumf>, %73, %cst_30 [2] : vector<2x8x8xf32> to vector<2x8xf32>
    %75 = vector.shape_cast %74 : vector<2x8xf32> to vector<2x8x1xf32>
    %76 = vector.broadcast %75 : vector<2x8x1xf32> to vector<2x8x8xf32>
    %77 = arith.subf %73, %76 : vector<2x8x8xf32>
    %78 = math.exp %77 : vector<2x8x8xf32>
    %cst_31 = arith.constant dense<0.000000e+00> : vector<2x8xf32>
    %79 = vector.multi_reduction <add>, %78, %cst_31 [2] : vector<2x8x8xf32> to vector<2x8xf32>
    %80 = vector.shape_cast %79 : vector<2x8xf32> to vector<2x8x1xf32>
    %81 = vector.broadcast %80 : vector<2x8x1xf32> to vector<2x8x8xf32>
    %82 = arith.divf %78, %81 : vector<2x8x8xf32>
    "tpu.trace_start"() <{level = 10 : i32, message = "bqk,bkd->bqd"}> : () -> ()
    %cst_32 = arith.constant dense<0.000000e+00> : vector<2x8x4xf32>
    %83 = tpu.matmul %82, %72, %cst_32 {dimension_numbers = #tpu.dot_dimension_numbers<[2], [1], [1], [2], [0, 0, 0, 1, 1, 2], [0], [0]>} : vector<2x8x8xf32>, vector<2x8x4xf32>, vector<2x8x4xf32> -> vector<2x8x4xf32>
    "tpu.trace_stop"() : () -> ()
    %c3 = arith.constant 3 : index
    %c0_33 = arith.constant 0 : index
    %c0_34 = arith.constant 0 : index
    %84 = vector.load %arg3[%c3, %c0_33, %c0_34] : memref<8x4x32xf32, #tpu.memory_space<vmem>>, vector<1x4x32xf32>
    %85 = vector.shape_cast %84 : vector<1x4x32xf32> to vector<4x32xf32>
    %86 = vector.shape_cast %83 : vector<2x8x4xf32> to vector<16x4xf32>
    %cst_35 = arith.constant dense<0.000000e+00> : vector<16x32xf32>
    %87 = tpu.matmul %86, %85, %cst_35 {dimension_numbers = #tpu.dot_dimension_numbers<[1], [0], [0], [1], [0, 0, 1, 1], [], []>} : vector<16x4xf32>, vector<4x32xf32>, vector<16x32xf32> -> vector<16x32xf32>
    %88 = arith.addf %69, %87 : vector<16x32xf32>
    %89 = vector.extract_strided_slice %7 {offsets = [0, 0, 16], sizes = [2, 8, 4], strides = [1, 1, 1]} : vector<2x8x32xf32> to vector<2x8x4xf32>
    %90 = vector.extract_strided_slice %9 {offsets = [0, 0, 16], sizes = [2, 8, 4], strides = [1, 1, 1]} : vector<2x8x32xf32> to vector<2x8x4xf32>
    %91 = vector.extract_strided_slice %11 {offsets = [0, 0, 16], sizes = [2, 8, 4], strides = [1, 1, 1]} : vector<2x8x32xf32> to vector<2x8x4xf32>
    "tpu.trace_start"() <{level = 10 : i32, message = "bqd,bkd->bqk"}> : () -> ()
    %cst_36 = arith.constant dense<0.000000e+00> : vector<2x8x8xf32>
    %92 = tpu.matmul %89, %90, %cst_36 {dimension_numbers = #tpu.dot_dimension_numbers<[2], [2], [1], [1], [0, 0, 0, 1, 1, 1], [0], [0]>} : vector<2x8x4xf32>, vector<2x8x4xf32>, vector<2x8x8xf32> -> vector<2x8x8xf32>
    "tpu.trace_stop"() : () -> ()
    %cst_37 = arith.constant dense<0xFF800000> : vector<2x8xf32>
    %93 = vector.multi_reduction <maximumf>, %92, %cst_37 [2] : vector<2x8x8xf32> to vector<2x8xf32>
    %94 = vector.shape_cast %93 : vector<2x8xf32> to vector<2x8x1xf32>
    %95 = vector.broadcast %94 : vector<2x8x1xf32> to vector<2x8x8xf32>
    %96 = arith.subf %92, %95 : vector<2x8x8xf32>
    %97 = math.exp %96 : vector<2x8x8xf32>
    %cst_38 = arith.constant dense<0.000000e+00> : vector<2x8xf32>
    %98 = vector.multi_reduction <add>, %97, %cst_38 [2] : vector<2x8x8xf32> to vector<2x8xf32>
    %99 = vector.shape_cast %98 : vector<2x8xf32> to vector<2x8x1xf32>
    %100 = vector.broadcast %99 : vector<2x8x1xf32> to vector<2x8x8xf32>
    %101 = arith.divf %97, %100 : vector<2x8x8xf32>
    "tpu.trace_start"() <{level = 10 : i32, message = "bqk,bkd->bqd"}> : () -> ()
    %cst_39 = arith.constant dense<0.000000e+00> : vector<2x8x4xf32>
    %102 = tpu.matmul %101, %91, %cst_39 {dimension_numbers = #tpu.dot_dimension_numbers<[2], [1], [1], [2], [0, 0, 0, 1, 1, 2], [0], [0]>} : vector<2x8x8xf32>, vector<2x8x4xf32>, vector<2x8x4xf32> -> vector<2x8x4xf32>
    "tpu.trace_stop"() : () -> ()
    %c4 = arith.constant 4 : index
    %c0_40 = arith.constant 0 : index
    %c0_41 = arith.constant 0 : index
    %103 = vector.load %arg3[%c4, %c0_40, %c0_41] : memref<8x4x32xf32, #tpu.memory_space<vmem>>, vector<1x4x32xf32>
    %104 = vector.shape_cast %103 : vector<1x4x32xf32> to vector<4x32xf32>
    %105 = vector.shape_cast %102 : vector<2x8x4xf32> to vector<16x4xf32>
    %cst_42 = arith.constant dense<0.000000e+00> : vector<16x32xf32>
    %106 = tpu.matmul %105, %104, %cst_42 {dimension_numbers = #tpu.dot_dimension_numbers<[1], [0], [0], [1], [0, 0, 1, 1], [], []>} : vector<16x4xf32>, vector<4x32xf32>, vector<16x32xf32> -> vector<16x32xf32>
    %107 = arith.addf %88, %106 : vector<16x32xf32>
    %108 = vector.extract_strided_slice %7 {offsets = [0, 0, 20], sizes = [2, 8, 4], strides = [1, 1, 1]} : vector<2x8x32xf32> to vector<2x8x4xf32>
    %109 = vector.extract_strided_slice %9 {offsets = [0, 0, 20], sizes = [2, 8, 4], strides = [1, 1, 1]} : vector<2x8x32xf32> to vector<2x8x4xf32>
    %110 = vector.extract_strided_slice %11 {offsets = [0, 0, 20], sizes = [2, 8, 4], strides = [1, 1, 1]} : vector<2x8x32xf32> to vector<2x8x4xf32>
    "tpu.trace_start"() <{level = 10 : i32, message = "bqd,bkd->bqk"}> : () -> ()
    %cst_43 = arith.constant dense<0.000000e+00> : vector<2x8x8xf32>
    %111 = tpu.matmul %108, %109, %cst_43 {dimension_numbers = #tpu.dot_dimension_numbers<[2], [2], [1], [1], [0, 0, 0, 1, 1, 1], [0], [0]>} : vector<2x8x4xf32>, vector<2x8x4xf32>, vector<2x8x8xf32> -> vector<2x8x8xf32>
    "tpu.trace_stop"() : () -> ()
    %cst_44 = arith.constant dense<0xFF800000> : vector<2x8xf32>
    %112 = vector.multi_reduction <maximumf>, %111, %cst_44 [2] : vector<2x8x8xf32> to vector<2x8xf32>
    %113 = vector.shape_cast %112 : vector<2x8xf32> to vector<2x8x1xf32>
    %114 = vector.broadcast %113 : vector<2x8x1xf32> to vector<2x8x8xf32>
    %115 = arith.subf %111, %114 : vector<2x8x8xf32>
    %116 = math.exp %115 : vector<2x8x8xf32>
    %cst_45 = arith.constant dense<0.000000e+00> : vector<2x8xf32>
    %117 = vector.multi_reduction <add>, %116, %cst_45 [2] : vector<2x8x8xf32> to vector<2x8xf32>
    %118 = vector.shape_cast %117 : vector<2x8xf32> to vector<2x8x1xf32>
    %119 = vector.broadcast %118 : vector<2x8x1xf32> to vector<2x8x8xf32>
    %120 = arith.divf %116, %119 : vector<2x8x8xf32>
    "tpu.trace_start"() <{level = 10 : i32, message = "bqk,bkd->bqd"}> : () -> ()
    %cst_46 = arith.constant dense<0.000000e+00> : vector<2x8x4xf32>
    %121 = tpu.matmul %120, %110, %cst_46 {dimension_numbers = #tpu.dot_dimension_numbers<[2], [1], [1], [2], [0, 0, 0, 1, 1, 2], [0], [0]>} : vector<2x8x8xf32>, vector<2x8x4xf32>, vector<2x8x4xf32> -> vector<2x8x4xf32>
    "tpu.trace_stop"() : () -> ()
    %c5 = arith.constant 5 : index
    %c0_47 = arith.constant 0 : index
    %c0_48 = arith.constant 0 : index
    %122 = vector.load %arg3[%c5, %c0_47, %c0_48] : memref<8x4x32xf32, #tpu.memory_space<vmem>>, vector<1x4x32xf32>
    %123 = vector.shape_cast %122 : vector<1x4x32xf32> to vector<4x32xf32>
    %124 = vector.shape_cast %121 : vector<2x8x4xf32> to vector<16x4xf32>
    %cst_49 = arith.constant dense<0.000000e+00> : vector<16x32xf32>
    %125 = tpu.matmul %124, %123, %cst_49 {dimension_numbers = #tpu.dot_dimension_numbers<[1], [0], [0], [1], [0, 0, 1, 1], [], []>} : vector<16x4xf32>, vector<4x32xf32>, vector<16x32xf32> -> vector<16x32xf32>
    %126 = arith.addf %107, %125 : vector<16x32xf32>
    %127 = vector.extract_strided_slice %7 {offsets = [0, 0, 24], sizes = [2, 8, 4], strides = [1, 1, 1]} : vector<2x8x32xf32> to vector<2x8x4xf32>
    %128 = vector.extract_strided_slice %9 {offsets = [0, 0, 24], sizes = [2, 8, 4], strides = [1, 1, 1]} : vector<2x8x32xf32> to vector<2x8x4xf32>
    %129 = vector.extract_strided_slice %11 {offsets = [0, 0, 24], sizes = [2, 8, 4], strides = [1, 1, 1]} : vector<2x8x32xf32> to vector<2x8x4xf32>
    "tpu.trace_start"() <{level = 10 : i32, message = "bqd,bkd->bqk"}> : () -> ()
    %cst_50 = arith.constant dense<0.000000e+00> : vector<2x8x8xf32>
    %130 = tpu.matmul %127, %128, %cst_50 {dimension_numbers = #tpu.dot_dimension_numbers<[2], [2], [1], [1], [0, 0, 0, 1, 1, 1], [0], [0]>} : vector<2x8x4xf32>, vector<2x8x4xf32>, vector<2x8x8xf32> -> vector<2x8x8xf32>
    "tpu.trace_stop"() : () -> ()
    %cst_51 = arith.constant dense<0xFF800000> : vector<2x8xf32>
    %131 = vector.multi_reduction <maximumf>, %130, %cst_51 [2] : vector<2x8x8xf32> to vector<2x8xf32>
    %132 = vector.shape_cast %131 : vector<2x8xf32> to vector<2x8x1xf32>
    %133 = vector.broadcast %132 : vector<2x8x1xf32> to vector<2x8x8xf32>
    %134 = arith.subf %130, %133 : vector<2x8x8xf32>
    %135 = math.exp %134 : vector<2x8x8xf32>
    %cst_52 = arith.constant dense<0.000000e+00> : vector<2x8xf32>
    %136 = vector.multi_reduction <add>, %135, %cst_52 [2] : vector<2x8x8xf32> to vector<2x8xf32>
    %137 = vector.shape_cast %136 : vector<2x8xf32> to vector<2x8x1xf32>
    %138 = vector.broadcast %137 : vector<2x8x1xf32> to vector<2x8x8xf32>
    %139 = arith.divf %135, %138 : vector<2x8x8xf32>
    "tpu.trace_start"() <{level = 10 : i32, message = "bqk,bkd->bqd"}> : () -> ()
    %cst_53 = arith.constant dense<0.000000e+00> : vector<2x8x4xf32>
    %140 = tpu.matmul %139, %129, %cst_53 {dimension_numbers = #tpu.dot_dimension_numbers<[2], [1], [1], [2], [0, 0, 0, 1, 1, 2], [0], [0]>} : vector<2x8x8xf32>, vector<2x8x4xf32>, vector<2x8x4xf32> -> vector<2x8x4xf32>
    "tpu.trace_stop"() : () -> ()
    %c6 = arith.constant 6 : index
    %c0_54 = arith.constant 0 : index
    %c0_55 = arith.constant 0 : index
    %141 = vector.load %arg3[%c6, %c0_54, %c0_55] : memref<8x4x32xf32, #tpu.memory_space<vmem>>, vector<1x4x32xf32>
    %142 = vector.shape_cast %141 : vector<1x4x32xf32> to vector<4x32xf32>
    %143 = vector.shape_cast %140 : vector<2x8x4xf32> to vector<16x4xf32>
    %cst_56 = arith.constant dense<0.000000e+00> : vector<16x32xf32>
    %144 = tpu.matmul %143, %142, %cst_56 {dimension_numbers = #tpu.dot_dimension_numbers<[1], [0], [0], [1], [0, 0, 1, 1], [], []>} : vector<16x4xf32>, vector<4x32xf32>, vector<16x32xf32> -> vector<16x32xf32>
    %145 = arith.addf %126, %144 : vector<16x32xf32>
    %146 = vector.extract_strided_slice %7 {offsets = [0, 0, 28], sizes = [2, 8, 4], strides = [1, 1, 1]} : vector<2x8x32xf32> to vector<2x8x4xf32>
    %147 = vector.extract_strided_slice %9 {offsets = [0, 0, 28], sizes = [2, 8, 4], strides = [1, 1, 1]} : vector<2x8x32xf32> to vector<2x8x4xf32>
    %148 = vector.extract_strided_slice %11 {offsets = [0, 0, 28], sizes = [2, 8, 4], strides = [1, 1, 1]} : vector<2x8x32xf32> to vector<2x8x4xf32>
    "tpu.trace_start"() <{level = 10 : i32, message = "bqd,bkd->bqk"}> : () -> ()
    %cst_57 = arith.constant dense<0.000000e+00> : vector<2x8x8xf32>
    %149 = tpu.matmul %146, %147, %cst_57 {dimension_numbers = #tpu.dot_dimension_numbers<[2], [2], [1], [1], [0, 0, 0, 1, 1, 1], [0], [0]>} : vector<2x8x4xf32>, vector<2x8x4xf32>, vector<2x8x8xf32> -> vector<2x8x8xf32>
    "tpu.trace_stop"() : () -> ()
    %cst_58 = arith.constant dense<0xFF800000> : vector<2x8xf32>
    %150 = vector.multi_reduction <maximumf>, %149, %cst_58 [2] : vector<2x8x8xf32> to vector<2x8xf32>
    %151 = vector.shape_cast %150 : vector<2x8xf32> to vector<2x8x1xf32>
    %152 = vector.broadcast %151 : vector<2x8x1xf32> to vector<2x8x8xf32>
    %153 = arith.subf %149, %152 : vector<2x8x8xf32>
    %154 = math.exp %153 : vector<2x8x8xf32>
    %cst_59 = arith.constant dense<0.000000e+00> : vector<2x8xf32>
    %155 = vector.multi_reduction <add>, %154, %cst_59 [2] : vector<2x8x8xf32> to vector<2x8xf32>
    %156 = vector.shape_cast %155 : vector<2x8xf32> to vector<2x8x1xf32>
    %157 = vector.broadcast %156 : vector<2x8x1xf32> to vector<2x8x8xf32>
    %158 = arith.divf %154, %157 : vector<2x8x8xf32>
    "tpu.trace_start"() <{level = 10 : i32, message = "bqk,bkd->bqd"}> : () -> ()
    %cst_60 = arith.constant dense<0.000000e+00> : vector<2x8x4xf32>
    %159 = tpu.matmul %158, %148, %cst_60 {dimension_numbers = #tpu.dot_dimension_numbers<[2], [1], [1], [2], [0, 0, 0, 1, 1, 2], [0], [0]>} : vector<2x8x8xf32>, vector<2x8x4xf32>, vector<2x8x4xf32> -> vector<2x8x4xf32>
    "tpu.trace_stop"() : () -> ()
    %c7 = arith.constant 7 : index
    %c0_61 = arith.constant 0 : index
    %c0_62 = arith.constant 0 : index
    %160 = vector.load %arg3[%c7, %c0_61, %c0_62] : memref<8x4x32xf32, #tpu.memory_space<vmem>>, vector<1x4x32xf32>
    %161 = vector.shape_cast %160 : vector<1x4x32xf32> to vector<4x32xf32>
    %162 = vector.shape_cast %159 : vector<2x8x4xf32> to vector<16x4xf32>
    %cst_63 = arith.constant dense<0.000000e+00> : vector<16x32xf32>
    %163 = tpu.matmul %162, %161, %cst_63 {dimension_numbers = #tpu.dot_dimension_numbers<[1], [0], [0], [1], [0, 0, 1, 1], [], []>} : vector<16x4xf32>, vector<4x32xf32>, vector<16x32xf32> -> vector<16x32xf32>
    %164 = arith.addf %145, %163 : vector<16x32xf32>
    %165 = vector.broadcast %2 : vector<1x32xf32> to vector<16x32xf32>
    %166 = arith.addf %164, %165 : vector<16x32xf32>
    %c0_64 = arith.constant 0 : index
    %c0_65 = arith.constant 0 : index
    %167 = vector.load %arg5[%c0_64, %c0_65] : memref<16x32xf32, #tpu.memory_space<vmem>>, vector<16x32xf32>
    tpu.vector_store %arg5[%c0_64, %c0_65], %166 {strides = array<i32>} : memref<16x32xf32, #tpu.memory_space<vmem>>, vector<16x32xf32>,
    return
  }
  func.func @transform_0(%arg0: i32) -> (i32, i32) {
    %c0_i32 = arith.constant 0 : i32
    %c0_i32_0 = arith.constant 0 : i32
    return %arg0, %c0_i32 : i32, i32
  }
  func.func @transform_1(%arg0: i32) -> (i32, i32) {
    %c0_i32 = arith.constant 0 : i32
    %c0_i32_0 = arith.constant 0 : i32
    %c0_i32_1 = arith.constant 0 : i32
    return %c0_i32, %c0_i32_0 : i32, i32
  }
  func.func @transform_2(%arg0: i32) -> (i32, i32, i32) {
    %c0_i32 = arith.constant 0 : i32
    %c0_i32_0 = arith.constant 0 : i32
    %c0_i32_1 = arith.constant 0 : i32
    %c0_i32_2 = arith.constant 0 : i32
    return %c0_i32, %c0_i32_0, %c0_i32_1 : i32, i32, i32
  }
  func.func @transform_3(%arg0: i32) -> (i32, i32) {
    %c0_i32 = arith.constant 0 : i32
    %c0_i32_0 = arith.constant 0 : i32
    %c0_i32_1 = arith.constant 0 : i32
    return %c0_i32, %c0_i32_0 : i32, i32
  }
  func.func @transform_4(%arg0: i32) -> (i32, i32) {
    %c0_i32 = arith.constant 0 : i32
    %c0_i32_0 = arith.constant 0 : i32
    return %arg0, %c0_i32 : i32, i32
  }
}

</mosaic_0001>

<bundles_post_ra>
// kernel: tpu_custom_call.1
= control target key start
LH: loop header
LB: loop body
LE: loop exit
PB: predicated region body
PF: predicated region fallthrough
CT: control target
= control target key end

     0   :  { %9 = vsyncpa [#allocation3], 0  ;;  %s4536_s0 = inlined_call_operand.hbm [shape: f32[16,32], index: 0, kind: input, shape index: {}]   ;;  %s4537_s1 = inlined_call_operand.hbm [shape: f32[32,96], index: 1, kind: input, shape index: {}]   ;;  %s4538_s2 = inlined_call_operand.hbm [shape: f32[8,4,32], index: 2, kind: input, shape index: {}]   ;;  %s4539_s3 = inlined_call_operand.vmem [shape: f32[1,32], index: 3, kind: input, shape index: {}]   ;;  %s4540_s4 = inlined_call_operand.hbm [shape: f32[16,32], index: 4, kind: output, shape index: {}]  }
   0x1   :  { %10 = vsyncpa [#allocation6], 0 }
   0x2   :  { %11 = vsyncpa [#allocation4], 0  ;;  %s4112_s15 = smov [#allocation5]   ;;  %s4113_s17 = smov [#allocation2]  }
   0x3   :  { %s29_s16 = sshll.u32 %s4112_s15, 4  ;;  %s17_s18 = sshll.u32 %s4113_s17, 4  ;;  %s30_s16 = int_to_ptr.vmem [resolvable:$true] %s29_s16  ;;  %s4169_s18 = int_to_ptr.vmem [resolvable:$true] %s17_s18 }
   0x4   :  { %s4018_s21 = scalar_lea.hbm %s4537_s1, 512 }
   0x5   :  { %p4019_p0 = scmp.ne.s32.totalorder %s4537_s1, %s4018_s21  ;;  %p4022_p1 = scmp.lt.u32.totalorder %s4018_s21, %s4537_s1 }
   0x7   :  { %p4024_p2 = pnand %p4022_p1, %p4019_p0 }
   0x9   :  { %4027 = shalt.err (!%p4024_p2)
}
   0xa   :  { %s4028_s26 = scalar_lea.vmem %s30_s16, 512  ;;  %p4033_p4 = scmp.lt.s32.totalorder %s30_s16, %s30_s16 }
   0xb   :  { %p4029_p3 = scmp.ne.s32.totalorder %s30_s16, %s4028_s26  ;;  %p4034_p5 = scmp.lt.s32.totalorder %s4028_s26, %s4028_s26 }
   0xd   :  { %p4035_p6 = por %p4034_p5, %p4033_p4 }
   0xf   :  { %p4036_p7 = pnand %p4035_p6, %p4029_p3 }
  0x11   :  { %4039 = shalt.err (!%p4036_p7)
}
  0x12   :  { %s4114_s27 = smov 128   ;;  %s4115_s28 = smov 8  }
  0x13   :  { %35 = dma.hbm_to_vmem [thread:$0]  %s4537_s1, 512, %s30_s16, [#allocation6], %s4114_s27, %s4114_s27, %s4115_s28  }
  0x14   :  { %s4040_s7 = scalar_lea.hbm %s4536_s0, 256 }
  0x15   :  { %p4041_p8 = scmp.ne.s32.totalorder %s4536_s0, %s4040_s7  ;;  %p4044_p9 = scmp.lt.u32.totalorder %s4040_s7, %s4536_s0 }
  0x17   :  { %p4046_p10 = pnand %p4044_p9, %p4041_p8 }
  0x19   :  { %4049 = shalt.err (!%p4046_p10)
}
  0x1a   :  { %s4050_s12 = scalar_lea.vmem %s4169_s18, 256  ;;  %p4055_p12 = scmp.lt.s32.totalorder %s4169_s18, %s4169_s18 }
  0x1b   :  { %p4051_p11 = scmp.ne.s32.totalorder %s4169_s18, %s4050_s12  ;;  %p4056_p13 = scmp.lt.s32.totalorder %s4050_s12, %s4050_s12 }
  0x1d   :  { %p4057_p0 = por %p4056_p13, %p4055_p12 }
  0x1f   :  { %p4058_p1 = pnand %p4057_p0, %p4051_p11 }
  0x21   :  { %4061 = shalt.err (!%p4058_p1)
}
  0x22   :  { %23 = dma.hbm_to_vmem [thread:$0]  %s4536_s0, 256, %s4169_s18, [#allocation3], %s4114_s27, %s4114_s27, %s4115_s28  }
  0x23   :  { %s4116_s14 = smov [#allocation7]   ;;  %s4062_s19 = scalar_lea.hbm %s4538_s2, 512 }
  0x24   :  { %s41_s15 = sshll.u32 %s4116_s14, 4  ;;  %p4063_p2 = scmp.ne.s32.totalorder %s4538_s2, %s4062_s19  ;;  %s42_s15 = int_to_ptr.vmem [resolvable:$true] %s41_s15 }
  0x25   :  { %p4066_p3 = scmp.lt.u32.totalorder %s4062_s19, %s4538_s2 }
  0x27   :  { %p4068_p4 = pnand %p4066_p3, %p4063_p2 }
  0x29   :  { %4071 = shalt.err (!%p4068_p4)
}
  0x2a   :  { %s4072_s24 = scalar_lea.vmem %s42_s15, 512  ;;  %p4077_p6 = scmp.lt.s32.totalorder %s42_s15, %s42_s15 }
  0x2b   :  { %p4073_p5 = scmp.ne.s32.totalorder %s42_s15, %s4072_s24  ;;  %p4078_p7 = scmp.lt.s32.totalorder %s4072_s24, %s4072_s24 }
  0x2d   :  { %p4079_p8 = por %p4078_p7, %p4077_p6 }
  0x2f   :  { %p4080_p9 = pnand %p4079_p8, %p4073_p5 }
  0x31   :  { %4083 = shalt.err (!%p4080_p9)
}
  0x32   :  { %s4117_s0 = smov 64   ;;  %s4118_s18 = smov 4  }
  0x33   :  { %47 = dma.hbm_to_vmem [thread:$0]  %s4538_s2, 512, %s42_s15, [#allocation6], %s4117_s0, %s4117_s0, %s4118_s18  }
  0x34   :  { %4106 = dma.done.wait [#allocation3], 256  }
  0x35   :  { %4107 = vsyncadd [#allocation3], 4294967040 }
  0x36   :  { %4108 = dma.done.wait [#allocation6], 1024  }
  0x37   :  { %4109 = vsyncadd [#allocation6], 4294966272  ;;  %vm66_vm0 = vcmask 261120   ;;  %v61_v0 = vld [vmem:[#allocation5] sm:$0xff]  ;;  %v62_v1 = vld [vmem:[#allocation5 + $0x8] sm:$0xff]  ;;  %v4119_v8 = vmov 0.0  }
  0x38   :  { %v63_v2 = vld [vmem:[#allocation5 + $0x10] sm:$0xff]  ;;  %v3900_v3 = vpack.c.bf16 %v62_v1, %v61_v0  ;;  %v64_v4 = vld [vmem:[#allocation5 + $0x18] sm:$0xff]  ;;  %3700 = vmatprep.subr.mxu1 %v4119_v8  ;;  %vm4120_vm1 = vmmov 0   ;;  %s4121_s2 = smov 96   ;;  %vm153_vm2 = vcmask 31744   ;;  %vm307_vm3 = vcmask 64512  }
  0x39   :  { %v59_v5 = vld [vmem:[#allocation2] sm:$0xff]  ;;  %v3904_v6 = vpack.c.bf16 %v64_v4, %v63_v2  ;;  %v60_v7 = vld [vmem:[#allocation2 + $0x8] sm:$0xff]  ;;  %3702 = vmatprep.mubr.msk.f32.mxu1 %vm4120_vm1, %v4119_v8  ;;  %s4122_s29 = smov 92   ;;  %s4123_s30 = smov 124   ;;  %vm821_vm4 = vcmask 1043456  }
  0x3a   :  { %3697 = vmatprep.mubr.msk.f32.mxu0 %vm66_vm0, %v59_v5  ;;  %3901 = vmatprep.subr.bf16.mxu0 %v3900_v3  ;;  %s4124_s5 = smov 60   ;;  %s4125_s6 = smov 120  }
  0x3b   :  { %3903 = vmatpush3.bf16.msra.mxu0 %v3900_v3  ;;  %s4126_s7 = smov 88   ;;  %s4127_s8 = smov 56  }
  0x3c   :  { %3905 = vmatprep.subr.bf16.mxu0 %v3904_v6  ;;  %s4128_s9 = smov 84   ;;  %s4129_s10 = smov 116  }
  0x3d   :  { %s4130_s11 = smov 80   ;;  %s4131_s12 = smov 52  }
  0x3e   :  { %s4132_s1 = smov 112   ;;  %s4133_s13 = smov 48  }
  0x3f   :  { %3907 = vmatpush3.bf16.msra.mxu0 %v3904_v6  ;;  %s4134_s14 = smov 76   ;;  %s4135_s15 = smov 108  }
  0x40   :  { %3720 = vmatprep.subr.mxu0 %v4119_v8  ;;  %s4136_s16 = smov 72   ;;  %s4137_s17 = smov 44  }
  0x41   :  { %s4138_s19 = smov 104   ;;  %s4139_s20 = smov 40  }
  0x42   :  { %3698 = vmatmul.mubr.msk.f32.vlgmr.msra.gmra.mrb[0].mxu0 %vm66_vm0, %v60_v7  ;;  %s4140_s21 = smov 68   ;;  %s4141_s22 = smov 100  }
  0x43   :  { %3722 = vmatprep.mubr.msk.f32.mxu0 %vm4120_vm1, %v4119_v8  ;;  %s4142_s23 = smov 36   ;;  %s4143_s18 = smov [#allocation8]  }
  0x44   :  { %s3507_s25 = sshll.u32 %s4143_s18, 4  ;;  %s3508_s25 = int_to_ptr.vmem [resolvable:$true] %s3507_s25 }
  0x45   :  { %s4084_s26 = scalar_lea.vmem %s3508_s25, 256  ;;  %p4089_p11 = scmp.lt.s32.totalorder %s3508_s25, %s3508_s25 }
  0x46   :  { %p4085_p10 = scmp.ne.s32.totalorder %s3508_s25, %s4084_s26  ;;  %p4090_p12 = scmp.lt.s32.totalorder %s4084_s26, %s4084_s26 }
  0x48   :  { %p4091_p13 = por %p4090_p12, %p4089_p11 }
  0x4a   :  { %p4092_p0 = pnand %p4091_p13, %p4085_p10 }
 0x115   :  { %v4228_v9 = vpop.f32.mrb[0].mxu0 }
 0x116   :  { %v4230_v10 = vpop.f32.mrb[1].mxu0  ;;  %v4245_v14 = vmul.f32 0.5, %v4228_v9 }
 0x117   :  { %151 = vrot.lane.b32.xlu0 %v4230_v10, %s4121_s2  ;;  %v4237_v12 = vmul.f32 0.5, %v4230_v10 }
 0x11b   :  { %230 = vrot.lane.b32.xlu0 %v4228_v9, %s4121_s2 }
 0x189   :  { %v152_v11 = vpop.permute.xlu0 %151 }
 0x18a   :  { %3701 = vmatpush3.xpose.msk.msra.mxu1 %vm153_vm2, %v152_v11 }
 0x18b   :  { %3705 = vmatprep.subr.mxu1 %v4119_v8 }
 0x18d   :  { %v231_v13 = vpop.permute.xlu0 %230  ;;  %3703 = vmatmul.mubr.msk.f32.vlgmr.msra.gmra.mrb[0].mxu1 %vm153_vm2, %v4237_v12 }
 0x18e   :  { %3706 = vmatpush3.xpose.msk.msra.mxu1 %vm153_vm2, %v231_v13  ;;  %3707 = vmatprep.mubr.msk.f32.mxu1 %vm4120_vm1, %v4119_v8 }
 0x18f   :  { %3710 = vmatprep.subr.mxu1 %v4119_v8 }
 0x191   :  { %3708 = vmatmul.mubr.msk.f32.vlgmr.msra.gmra.mrb[2].mxu1 %vm153_vm2, %v4245_v14 }
 0x192   :  { %3712 = vmatprep.mubr.msk.f32.mxu1 %vm4120_vm1, %v4119_v8 }
 0x260   :  { %v225_v15 = vpop.f32.mrb[0].mxu1 }
 0x261   :  { %v3704_v16 = vpop.f32.mrb[1].mxu1  ;;  %v308_v17 = vsel %vm307_vm3, %v225_v15, -inf }
 0x262   :  { %309 = vmax.xlane.f32.xlu1 %v308_v17  ;;  %v814_v17 = vld [vmem:[#allocation7 + $0x4] sm:$0xf] }
 0x264   :  { %v303_v18 = vpop.f32.mrb[2].mxu1 }
 0x265   :  { %v3709_v19 = vpop.f32.mrb[3].mxu1  ;;  %v311_v20 = vsel %vm307_vm3, %v303_v18, -inf }
 0x266   :  { %312 = vmax.xlane.f32.xlu1 %v311_v20 }
 0x277   :  { %330 = vrot.lane.b32.xlu1 %v4230_v10, %s4117_s0 }
 0x27b   :  { %406 = vrot.lane.b32.xlu1 %v4228_v9, %s4117_s0 }
 0x27f   :  { %563 = vrot.lane.b32.xlu1 %v4228_v9, %s4122_s29 }
 0x2ef   :  { %v310_v21 = vpop.xlane.xlu1 %309 }
 0x2f0   :  { %v314_v22 = vsub.f32 %v225_v15, %v310_v21 }
 0x2f2   :  { %v316_v23 = vmul.f32 1.442695, %v314_v22 }
 0x2f3   :  { %v313_v24 = vpop.xlane.xlu1 %312 }
 0x2f4   :  { %3954 = vpow2.f32 %v316_v23  ;;  %v315_v25 = vsub.f32 %v303_v18, %v313_v24  ;;  %v482_v18 = vld [vmem:[#allocation7] sm:$0xf] }
 0x2f6   :  { %v318_v26 = vmul.f32 1.442695, %v315_v25 }
 0x2f7   :  { %v331_v27 = vpop.permute.xlu1 %330 }
 0x2f8   :  { %3956 = vpow2.f32 %v318_v26  ;;  %3711 = vmatpush3.msra.mxu1 %v331_v27 }
 0x2f9   :  { %3715 = vmatprep.subr.mxu1 %v4119_v8 }
 0x2fb   :  { %v407_v32 = vpop.permute.xlu1 %406 }
 0x2fe   :  { %v3955_v28 = vpop.eup %3954 }
 0x2ff   :  { %v320_v29 = vsel %vm307_vm3, %v3955_v28, 0.0  ;;  %v564_v33 = vpop.permute.xlu1 %563 }
 0x300   :  { %321 = vadd.xlane.f32.xlu0 %v320_v29 }
 0x302   :  { %v3957_v30 = vpop.eup %3956 }
 0x303   :  { %v323_v31 = vsel %vm307_vm3, %v3957_v30, 0.0 }
 0x304   :  { %324 = vadd.xlane.f32.xlu1 %v323_v31 }
 0x315   :  { %561 = vrot.lane.b32.xlu1 %v4245_v14, %s4123_s30 }
 0x316   :  { %485 = vrot.lane.b32.xlu0 %v4230_v10, %s4122_s29 }
 0x319   :  { %483 = vrot.lane.b32.xlu1 %v4237_v12, %s4123_s30 }
 0x38d   :  { %v322_v34 = vpop.xlane.xlu0 %321 }
 0x38e   :  { %3958 = vrcp.f32 %v322_v34 }
 0x391   :  { %v486_v35 = vpop.permute.xlu0 %485  ;;  %v325_v36 = vpop.xlane.xlu1 %324 }
 0x392   :  { %3960 = vrcp.f32 %v325_v36  ;;  %3721 = vmatpush3.xpose.msk.msra.mxu0 %vm153_vm2, %v486_v35 }
 0x393   :  { %3730 = vmatprep.subr.mxu0 %v4119_v8 }
 0x395   :  { %v562_v37 = vpop.permute.xlu1 %561 }
 0x398   :  { %v3959_v38 = vpop.eup %3958 }
 0x399   :  { %v327_v39 = vmul.f32 %v3959_v38, %v3955_v28  ;;  %v484_v40 = vpop.permute.xlu1 %483 }
 0x39a   :  { %3723 = vmatmul.mubr.msk.f32.vlgmr.msra.gmra.mrb[2].mxu0 %vm153_vm2, %v484_v40 }
 0x39b   :  { %3713 = vmatmul.mubr.msk.f32.vlgmr.msra.gmra.mrb[4].mxu1 %vm307_vm3, %v327_v39  ;;  %3732 = vmatprep.mubr.msk.f32.mxu0 %vm4120_vm1, %v4119_v8 }
 0x39c   :  { %v3961_v41 = vpop.eup %3960  ;;  %3716 = vmatpush3.msra.mxu1 %v407_v32  ;;  %3717 = vmatprep.mubr.msk.f32.mxu1 %vm4120_vm1, %v4119_v8 }
 0x39d   :  { %v329_v42 = vmul.f32 %v3961_v41, %v3957_v30  ;;  %3725 = vmatprep.subr.mxu1 %v4119_v8  ;;  %v1315_v41 = vld [vmem:[#allocation7 + $0x8] sm:$0xf] }
 0x39f   :  { %3718 = vmatmul.mubr.msk.f32.vlgmr.msra.gmra.mrb[6].mxu1 %vm307_vm3, %v329_v42 }
 0x3a0   :  { %3727 = vmatprep.mubr.msk.f32.mxu1 %vm4120_vm1, %v4119_v8 }
 0x3a3   :  { %3726 = vmatpush3.xpose.msk.msra.mxu1 %vm153_vm2, %v564_v33 }
 0x3a4   :  { %3735 = vmatprep.subr.mxu1 %v4119_v8 }
 0x3a6   :  { %3728 = vmatmul.mubr.msk.f32.vlgmr.msra.gmra.mrb[8].mxu1 %vm153_vm2, %v562_v37 }
 0x3a7   :  { %3737 = vmatprep.mubr.msk.f32.mxu1 %vm4120_vm1, %v4119_v8 }
 0x46d   :  { %v557_v43 = vpop.f32.mrb[2].mxu0 }
 0x46e   :  { %v4282_v44 = vpop.f32.mrb[4].mxu1  ;;  %v3724_v45 = vpop.f32.mrb[3].mxu0  ;;  %v639_v52 = vsel %vm307_vm3, %v557_v43, -inf }
 0x46f   :  { %v3714_v46 = vpop.f32.mrb[5].mxu1 }
 0x472   :  { %v4284_v47 = vpop.f32.mrb[6].mxu1 }
 0x473   :  { %v3719_v48 = vpop.f32.mrb[7].mxu1 }
 0x479   :  { %v635_v49 = vpop.f32.mrb[8].mxu1 }
 0x47a   :  { %v3729_v50 = vpop.f32.mrb[9].mxu1  ;;  %v642_v51 = vsel %vm307_vm3, %v635_v49, -inf }
 0x47b   :  { %643 = vmax.xlane.f32.xlu1 %v642_v51 }
 0x48c   :  { %737 = vrot.lane.b32.xlu1 %v4228_v9, %s4124_s5 }
 0x490   :  { %984 = vrot.lane.b32.xlu1 %v4237_v12, %s4125_s6 }
 0x494   :  { %1064 = vrot.lane.b32.xlu1 %v4228_v9, %s4126_s7 }
 0x498   :  { %1062 = vrot.lane.b32.xlu1 %v4245_v14, %s4125_s6 }
 0x4bc   :  { %640 = vmax.xlane.f32.xlu1 %v639_v52 }
 0x508   :  { %v644_v53 = vpop.xlane.xlu1 %643 }
 0x509   :  { %v646_v54 = vsub.f32 %v635_v49, %v644_v53 }
 0x50b   :  { %v649_v55 = vmul.f32 1.442695, %v646_v54 }
 0x50c   :  { %v738_v56 = vpop.permute.xlu1 %737 }
 0x50d   :  { %3962 = vpow2.f32 %v649_v55  ;;  %3736 = vmatpush3.msra.mxu1 %v738_v56 }
 0x50e   :  { %3750 = vmatprep.subr.mxu1 %v4119_v8 }
 0x510   :  { %v985_v59 = vpop.permute.xlu1 %984 }
 0x514   :  { %v1065_v60 = vpop.permute.xlu1 %1064 }
 0x517   :  { %v3963_v57 = vpop.eup %3962 }
 0x518   :  { %v654_v58 = vsel %vm307_vm3, %v3963_v57, 0.0  ;;  %v1063_v61 = vpop.permute.xlu1 %1062 }
 0x519   :  { %655 = vadd.xlane.f32.xlu0 %v654_v58 }
 0x52f   :  { %986 = vrot.lane.b32.xlu0 %v4230_v10, %s4126_s7 }
 0x549   :  { %v641_v62 = vpop.xlane.xlu1 %640 }
 0x54a   :  { %v645_v63 = vsub.f32 %v557_v43, %v641_v62 }
 0x54c   :  { %v647_v0 = vmul.f32 1.442695, %v645_v63 }
 0x54e   :  { %3964 = vpow2.f32 %v647_v0 }
 0x558   :  { %v3965_v1 = vpop.eup %3964 }
 0x559   :  { %v651_v2 = vsel %vm307_vm3, %v3965_v1, 0.0 }
 0x55a   :  { %652 = vadd.xlane.f32.xlu0 %v651_v2 }
 0x570   :  { %661 = vrot.lane.b32.xlu0 %v4230_v10, %s4124_s5 }
 0x574   :  { %1238 = vrot.lane.b32.xlu0 %v4228_v9, %s4127_s8 }
 0x578   :  { %1404 = vrot.lane.b32.xlu0 %v4230_v10, %s4128_s9 }
 0x57c   :  { %1402 = vrot.lane.b32.xlu0 %v4237_v12, %s4129_s10 }
 0x580   :  { %1482 = vrot.lane.b32.xlu0 %v4228_v9, %s4128_s9 }
 0x5a6   :  { %v656_v3 = vpop.xlane.xlu0 %655 }
 0x5a7   :  { %3966 = vrcp.f32 %v656_v3 }
 0x5aa   :  { %v987_v6 = vpop.permute.xlu0 %986 }
 0x5b1   :  { %v3967_v4 = vpop.eup %3966 }
 0x5b2   :  { %v660_v5 = vmul.f32 %v3967_v4, %v3963_v57 }
 0x5b4   :  { %3738 = vmatmul.mubr.msk.f32.vlgmr.msra.gmra.mrb[10].mxu1 %vm307_vm3, %v660_v5 }
 0x5b5   :  { %3751 = vmatpush3.xpose.msk.msra.mxu1 %vm153_vm2, %v987_v6  ;;  %3752 = vmatprep.mubr.msk.f32.mxu1 %vm4120_vm1, %v4119_v8 }
 0x5b6   :  { %3755 = vmatprep.subr.mxu1 %v4119_v8 }
 0x5b8   :  { %3753 = vmatmul.mubr.msk.f32.vlgmr.msra.gmra.mrb[12].mxu1 %vm153_vm2, %v985_v59 }
 0x5b9   :  { %3756 = vmatpush3.xpose.msk.msra.mxu1 %vm153_vm2, %v1065_v60  ;;  %3757 = vmatprep.mubr.msk.f32.mxu1 %vm4120_vm1, %v4119_v8 }
 0x5ba   :  { %3765 = vmatprep.subr.mxu1 %v4119_v8 }
 0x5bc   :  { %3758 = vmatmul.mubr.msk.f32.vlgmr.msra.gmra.mrb[14].mxu1 %vm153_vm2, %v1063_v61 }
 0x5bd   :  { %3767 = vmatprep.mubr.msk.f32.mxu1 %vm4120_vm1, %v4119_v8 }
 0x5e7   :  { %v653_v7 = vpop.xlane.xlu0 %652 }
 0x5e8   :  { %3968 = vrcp.f32 %v653_v7 }
 0x5eb   :  { %v662_v11 = vpop.permute.xlu0 %661 }
 0x5ec   :  { %3731 = vmatpush3.msra.mxu0 %v662_v11 }
 0x5ed   :  { %3740 = vmatprep.subr.msk.mxu0 %vm821_vm4, %v814_v17 }
 0x5ef   :  { %v1239_v13 = vpop.permute.xlu0 %1238 }
 0x5f0   :  { %3766 = vmatpush3.msra.mxu1 %v1239_v13 }
 0x5f1   :  { %3775 = vmatprep.subr.mxu1 %v4119_v8 }
 0x5f2   :  { %v3969_v15 = vpop.eup %3968 }
 0x5f3   :  { %v658_v16 = vmul.f32 %v3969_v15, %v3965_v1  ;;  %v1405_v46 = vpop.permute.xlu0 %1404 }
 0x5f5   :  { %3733 = vmatmul.mubr.msk.f32.vlgmr.msra.gmra.mrb[4].mxu0 %vm307_vm3, %v658_v16 }
 0x5f6   :  { %3741 = vmatpush3.msk.msra.mxu0 %vm821_vm4, %v814_v17 }
 0x5f7   :  { %3745 = vmatprep.subr.msk.mxu0 %vm821_vm4, %v482_v18  ;;  %v1403_v48 = vpop.permute.xlu0 %1402 }
 0x5fb   :  { %v1483_v52 = vpop.permute.xlu0 %1482 }
 0x687   :  { %v809_v19 = vpop.f32.mrb[10].mxu1 }
 0x688   :  { %v3739_v20 = vpop.f32.mrb[11].mxu1 }
 0x68b   :  { %v1058_v21 = vpop.f32.mrb[12].mxu1 }
 0x68c   :  { %v3754_v22 = vpop.f32.mrb[13].mxu1  ;;  %v1140_v23 = vsel %vm307_vm3, %v1058_v21, -inf }
 0x68d   :  { %1141 = vmax.xlane.f32.xlu1 %v1140_v23 }
 0x68f   :  { %v1136_v24 = vpop.f32.mrb[14].mxu1 }
 0x690   :  { %v3759_v25 = vpop.f32.mrb[15].mxu1  ;;  %v1143_v26 = vsel %vm307_vm3, %v1136_v24, -inf }
 0x691   :  { %1144 = vmax.xlane.f32.xlu1 %v1143_v26 }
 0x6c8   :  { %v733_v27 = vpop.f32.mrb[4].mxu0 }
 0x6c9   :  { %v3734_v28 = vpop.f32.mrb[5].mxu0  ;;  %3742 = vmatprep.mubr.msk.f32.mxu0 %vm153_vm2, %v733_v27 }
 0x6ca   :  { %3743 = vmatmul.mubr.msk.f32.vlgmr.msra.gmra.mrb[6].mxu0 %vm153_vm2, %v809_v19 }
 0x6cb   :  { %3747 = vmatprep.mubr.msk.f32.mxu0 %vm153_vm2, %v4282_v44  ;;  %3746 = vmatpush3.msk.msra.mxu0 %vm821_vm4, %v482_v18 }
 0x6cc   :  { %3760 = vmatprep.subr.mxu0 %v4119_v8 }
 0x6d2   :  { %3748 = vmatmul.mubr.msk.f32.vlgmr.msra.gmra.mrb[6].mxu0 %vm153_vm2, %v4284_v47 }
 0x6d3   :  { %3762 = vmatprep.mubr.msk.f32.mxu0 %vm4120_vm1, %v4119_v8 }
 0x71a   :  { %v1142_v29 = vpop.xlane.xlu1 %1141 }
 0x71b   :  { %v1146_v30 = vsub.f32 %v1058_v21, %v1142_v29 }
 0x71d   :  { %v1148_v31 = vmul.f32 1.442695, %v1146_v30 }
 0x71e   :  { %v1145_v32 = vpop.xlane.xlu1 %1144 }
 0x71f   :  { %3970 = vpow2.f32 %v1148_v31  ;;  %v1147_v33 = vsub.f32 %v1136_v24, %v1145_v32 }
 0x721   :  { %v1150_v34 = vmul.f32 1.442695, %v1147_v33  ;;  %v1733_v33 = vld [vmem:[#allocation7 + $0xc] sm:$0xf] }
 0x723   :  { %3972 = vpow2.f32 %v1150_v34 }
 0x729   :  { %v3971_v35 = vpop.eup %3970 }
 0x72a   :  { %v1152_v36 = vsel %vm307_vm3, %v3971_v35, 0.0 }
 0x72b   :  { %1153 = vadd.xlane.f32.xlu1 %v1152_v36 }
 0x72d   :  { %v3973_v37 = vpop.eup %3972 }
 0x72e   :  { %v1155_v38 = vsel %vm307_vm3, %v3973_v37, 0.0 }
 0x72f   :  { %1156 = vadd.xlane.f32.xlu1 %v1155_v38 }
 0x740   :  { %1162 = vrot.lane.b32.xlu1 %v4230_v10, %s4127_s8 }
 0x744   :  { %1480 = vrot.lane.b32.xlu1 %v4245_v14, %s4129_s10 }
 0x748   :  { %1822 = vrot.lane.b32.xlu1 %v4230_v10, %s4130_s11 }
 0x7b8   :  { %v1154_v39 = vpop.xlane.xlu1 %1153 }
 0x7b9   :  { %3974 = vrcp.f32 %v1154_v39 }
 0x7bc   :  { %v1157_v40 = vpop.xlane.xlu1 %1156 }
 0x7bd   :  { %3976 = vrcp.f32 %v1157_v40 }
 0x7c0   :  { %v1163_v42 = vpop.permute.xlu1 %1162 }
 0x7c1   :  { %3761 = vmatpush3.msra.mxu0 %v1163_v42 }
 0x7c2   :  { %3770 = vmatprep.subr.msk.mxu0 %vm821_vm4, %v1315_v41 }
 0x7c3   :  { %v3975_v43 = vpop.eup %3974 }
 0x7c4   :  { %v1159_v44 = vmul.f32 %v3975_v43, %v3971_v35  ;;  %v1481_v54 = vpop.permute.xlu1 %1480 }
 0x7c6   :  { %3763 = vmatmul.mubr.msk.f32.vlgmr.msra.gmra.mrb[8].mxu0 %vm307_vm3, %v1159_v44 }
 0x7c7   :  { %v3977_v45 = vpop.eup %3976  ;;  %3771 = vmatpush3.msk.msra.mxu0 %vm821_vm4, %v1315_v41 }
 0x7c8   :  { %v1161_v47 = vmul.f32 %v3977_v45, %v3973_v37  ;;  %3780 = vmatprep.subr.mxu0 %v4119_v8  ;;  %v1823_v3 = vpop.permute.xlu1 %1822 }
 0x7ca   :  { %3768 = vmatmul.mubr.msk.f32.vlgmr.msra.gmra.mrb[16].mxu1 %vm307_vm3, %v1161_v47 }
 0x7cb   :  { %3776 = vmatpush3.xpose.msk.msra.mxu1 %vm153_vm2, %v1405_v46  ;;  %3777 = vmatprep.mubr.msk.f32.mxu1 %vm4120_vm1, %v4119_v8 }
 0x7cc   :  { %3785 = vmatprep.subr.mxu1 %v4119_v8 }
 0x7ce   :  { %3778 = vmatmul.mubr.msk.f32.vlgmr.msra.gmra.mrb[18].mxu1 %vm153_vm2, %v1403_v48  ;;  %v2151_v48 = vld [vmem:[#allocation7 + $0x10] sm:$0xf] }
 0x7cf   :  { %3787 = vmatprep.mubr.msk.f32.mxu1 %vm4120_vm1, %v4119_v8 }
 0x899   :  { %v1234_v49 = vpop.f32.mrb[8].mxu0 }
 0x89a   :  { %v3764_v50 = vpop.f32.mrb[9].mxu0  ;;  %3772 = vmatprep.mubr.msk.f32.mxu0 %vm153_vm2, %v1234_v49 }
 0x89d   :  { %v1310_v51 = vpop.f32.mrb[16].mxu1 }
 0x89e   :  { %v3769_v53 = vpop.f32.mrb[17].mxu1  ;;  %3773 = vmatmul.mubr.msk.f32.vlgmr.msra.gmra.mrb[6].mxu0 %vm153_vm2, %v1310_v51 }
 0x89f   :  { %3781 = vmatpush3.xpose.msk.msra.mxu0 %vm153_vm2, %v1483_v52  ;;  %3782 = vmatprep.mubr.msk.f32.mxu0 %vm4120_vm1, %v4119_v8 }
 0x8a0   :  { %3790 = vmatprep.subr.mxu0 %v4119_v8 }
 0x8a1   :  { %v1476_v55 = vpop.f32.mrb[18].mxu1 }
 0x8a2   :  { %v3779_v56 = vpop.f32.mrb[19].mxu1  ;;  %3783 = vmatmul.mubr.msk.f32.vlgmr.msra.gmra.mrb[10].mxu0 %vm153_vm2, %v1481_v54  ;;  %v1558_v57 = vsel %vm307_vm3, %v1476_v55, -inf }
 0x8a3   :  { %1559 = vmax.xlane.f32.xlu0 %v1558_v57  ;;  %3792 = vmatprep.mubr.msk.f32.mxu0 %vm4120_vm1, %v4119_v8 }
 0x8b9   :  { %1580 = vrot.lane.b32.xlu0 %v4230_v10, %s4131_s12 }
 0x8bd   :  { %1820 = vrot.lane.b32.xlu0 %v4237_v12, %s4132_s1 }
 0x8c1   :  { %1898 = vrot.lane.b32.xlu0 %v4245_v14, %s4132_s1 }
 0x930   :  { %v1560_v58 = vpop.xlane.xlu0 %1559 }
 0x931   :  { %v1564_v59 = vsub.f32 %v1476_v55, %v1560_v58 }
 0x933   :  { %v1566_v60 = vmul.f32 1.442695, %v1564_v59 }
 0x934   :  { %v1581_v61 = vpop.permute.xlu0 %1580 }
 0x935   :  { %3978 = vpow2.f32 %v1566_v60  ;;  %3786 = vmatpush3.msra.mxu1 %v1581_v61 }
 0x936   :  { %3800 = vmatprep.subr.mxu1 %v4119_v8 }
 0x938   :  { %v1821_v7 = vpop.permute.xlu0 %1820 }
 0x93c   :  { %v1899_v13 = vpop.permute.xlu0 %1898 }
 0x93f   :  { %v3979_v62 = vpop.eup %3978 }
 0x940   :  { %v1570_v63 = vsel %vm307_vm3, %v3979_v62, 0.0 }
 0x941   :  { %1571 = vadd.xlane.f32.xlu1 %v1570_v63 }
 0x952   :  { %1900 = vrot.lane.b32.xlu1 %v4228_v9, %s4130_s11 }
 0x975   :  { %v1554_v0 = vpop.f32.mrb[10].mxu0 }
 0x976   :  { %v3784_v1 = vpop.f32.mrb[11].mxu0  ;;  %v1561_v2 = vsel %vm307_vm3, %v1554_v0, -inf }
 0x977   :  { %1562 = vmax.xlane.f32.xlu1 %v1561_v2 }
 0x9ce   :  { %v1572_v4 = vpop.xlane.xlu1 %1571 }
 0x9cf   :  { %3980 = vrcp.f32 %v1572_v4 }
 0x9d2   :  { %v1901_v11 = vpop.permute.xlu1 %1900 }
 0x9d9   :  { %v3981_v5 = vpop.eup %3980 }
 0x9da   :  { %v1577_v6 = vmul.f32 %v3981_v5, %v3979_v62 }
 0x9dc   :  { %3788 = vmatmul.mubr.msk.f32.vlgmr.msra.gmra.mrb[20].mxu1 %vm307_vm3, %v1577_v6 }
 0x9dd   :  { %3801 = vmatpush3.xpose.msk.msra.mxu1 %vm153_vm2, %v1823_v3  ;;  %3802 = vmatprep.mubr.msk.f32.mxu1 %vm4120_vm1, %v4119_v8 }
 0x9de   :  { %3805 = vmatprep.subr.mxu1 %v4119_v8 }
 0x9e0   :  { %3803 = vmatmul.mubr.msk.f32.vlgmr.msra.gmra.mrb[22].mxu1 %vm153_vm2, %v1821_v7 }
 0x9e1   :  { %3806 = vmatpush3.xpose.msk.msra.mxu1 %vm153_vm2, %v1901_v11  ;;  %3807 = vmatprep.mubr.msk.f32.mxu1 %vm4120_vm1, %v4119_v8 }
 0x9e2   :  { %3815 = vmatprep.subr.mxu1 %v4119_v8 }
 0x9e4   :  { %3808 = vmatmul.mubr.msk.f32.vlgmr.msra.gmra.mrb[24].mxu1 %vm153_vm2, %v1899_v13 }
 0x9e5   :  { %3817 = vmatprep.mubr.msk.f32.mxu1 %vm4120_vm1, %v4119_v8 }
 0xa04   :  { %v1563_v15 = vpop.xlane.xlu1 %1562 }
 0xa05   :  { %v1565_v16 = vsub.f32 %v1554_v0, %v1563_v15 }
 0xa07   :  { %v1568_v17 = vmul.f32 1.442695, %v1565_v16 }
 0xa09   :  { %3982 = vpow2.f32 %v1568_v17 }
 0xa13   :  { %v3983_v18 = vpop.eup %3982 }
 0xa14   :  { %v1573_v19 = vsel %vm307_vm3, %v3983_v18, 0.0 }
 0xa15   :  { %1574 = vadd.xlane.f32.xlu0 %v1573_v19 }
 0xa2b   :  { %1656 = vrot.lane.b32.xlu0 %v4228_v9, %s4131_s12 }
 0xa2f   :  { %2074 = vrot.lane.b32.xlu0 %v4228_v9, %s4133_s13 }
 0xa33   :  { %2240 = vrot.lane.b32.xlu0 %v4230_v10, %s4134_s14 }
 0xa37   :  { %2238 = vrot.lane.b32.xlu0 %v4237_v12, %s4135_s15 }
 0xa3b   :  { %2318 = vrot.lane.b32.xlu0 %v4228_v9, %s4134_s14 }
 0xaa2   :  { %v1575_v20 = vpop.xlane.xlu0 %1574 }
 0xaa3   :  { %3984 = vrcp.f32 %v1575_v20 }
 0xaa6   :  { %v1657_v21 = vpop.permute.xlu0 %1656 }
 0xaa7   :  { %3791 = vmatpush3.msra.mxu0 %v1657_v21 }
 0xaa8   :  { %3795 = vmatprep.subr.msk.mxu0 %vm821_vm4, %v1733_v33 }
 0xaaa   :  { %v2075_v22 = vpop.permute.xlu0 %2074 }
 0xaab   :  { %3816 = vmatpush3.msra.mxu1 %v2075_v22 }
 0xaac   :  { %3825 = vmatprep.subr.mxu1 %v4119_v8 }
 0xaad   :  { %v3985_v23 = vpop.eup %3984 }
 0xaae   :  { %v1579_v24 = vmul.f32 %v3985_v23, %v3983_v18  ;;  %v2241_v53 = vpop.permute.xlu0 %2240 }
 0xaaf   :  { %v1652_v25 = vpop.f32.mrb[20].mxu1 }
 0xab0   :  { %v3789_v26 = vpop.f32.mrb[21].mxu1  ;;  %3793 = vmatmul.mubr.msk.f32.vlgmr.msra.gmra.mrb[12].mxu0 %vm307_vm3, %v1579_v24 }
 0xab1   :  { %3797 = vmatprep.mubr.msk.f32.mxu0 %vm153_vm2, %v1652_v25  ;;  %3796 = vmatpush3.msk.msra.mxu0 %vm821_vm4, %v1733_v33 }
 0xab2   :  { %3810 = vmatprep.subr.mxu0 %v4119_v8  ;;  %v2239_v55 = vpop.permute.xlu0 %2238 }
 0xab3   :  { %v1894_v27 = vpop.f32.mrb[22].mxu1 }
 0xab4   :  { %v3804_v28 = vpop.f32.mrb[23].mxu1  ;;  %v1976_v29 = vsel %vm307_vm3, %v1894_v27, -inf }
 0xab5   :  { %1977 = vmax.xlane.f32.xlu1 %v1976_v29 }
 0xab6   :  { %v2319_v59 = vpop.permute.xlu0 %2318 }
 0xab7   :  { %v1972_v30 = vpop.f32.mrb[24].mxu1 }
 0xab8   :  { %v3809_v31 = vpop.f32.mrb[25].mxu1  ;;  %v1979_v32 = vsel %vm307_vm3, %v1972_v30, -inf }
 0xab9   :  { %1980 = vmax.xlane.f32.xlu1 %v1979_v32 }
 0xb42   :  { %v1978_v34 = vpop.xlane.xlu1 %1977 }
 0xb43   :  { %v1982_v35 = vsub.f32 %v1894_v27, %v1978_v34 }
 0xb45   :  { %v1984_v36 = vmul.f32 1.442695, %v1982_v35 }
 0xb46   :  { %v1981_v37 = vpop.xlane.xlu1 %1980 }
 0xb47   :  { %3986 = vpow2.f32 %v1984_v36  ;;  %v1983_v38 = vsub.f32 %v1972_v30, %v1981_v37 }
 0xb49   :  { %v1986_v39 = vmul.f32 1.442695, %v1983_v38 }
 0xb4b   :  { %3988 = vpow2.f32 %v1986_v39  ;;  %v2569_v39 = vld [vmem:[#allocation7 + $0x14] sm:$0xf] }
 0xb51   :  { %v3987_v40 = vpop.eup %3986 }
 0xb52   :  { %v1988_v41 = vsel %vm307_vm3, %v3987_v40, 0.0 }
 0xb53   :  { %1989 = vadd.xlane.f32.xlu1 %v1988_v41 }
 0xb55   :  { %v3989_v42 = vpop.eup %3988 }
 0xb56   :  { %v1991_v43 = vsel %vm307_vm3, %v3989_v42, 0.0 }
 0xb57   :  { %1992 = vadd.xlane.f32.xlu1 %v1991_v43 }
 0xb68   :  { %1998 = vrot.lane.b32.xlu1 %v4230_v10, %s4133_s13 }
 0xb6c   :  { %2316 = vrot.lane.b32.xlu1 %v4245_v14, %s4135_s15 }
 0xb70   :  { %2658 = vrot.lane.b32.xlu1 %v4230_v10, %s4136_s16 }
 0xb83   :  { %v1728_v44 = vpop.f32.mrb[12].mxu0 }
 0xb84   :  { %v3794_v45 = vpop.f32.mrb[13].mxu0  ;;  %3798 = vmatmul.mubr.msk.f32.vlgmr.msra.gmra.mrb[6].mxu0 %vm153_vm2, %v1728_v44 }
 0xb85   :  { %3812 = vmatprep.mubr.msk.f32.mxu0 %vm4120_vm1, %v4119_v8 }
 0xbe0   :  { %v1990_v46 = vpop.xlane.xlu1 %1989 }
 0xbe1   :  { %3990 = vrcp.f32 %v1990_v46 }
 0xbe4   :  { %v1993_v47 = vpop.xlane.xlu1 %1992 }
 0xbe5   :  { %3992 = vrcp.f32 %v1993_v47 }
 0xbe8   :  { %v1999_v49 = vpop.permute.xlu1 %1998 }
 0xbe9   :  { %3811 = vmatpush3.msra.mxu0 %v1999_v49 }
 0xbea   :  { %3820 = vmatprep.subr.msk.mxu0 %vm821_vm4, %v2151_v48 }
 0xbeb   :  { %v3991_v50 = vpop.eup %3990 }
 0xbec   :  { %v1995_v51 = vmul.f32 %v3991_v50, %v3987_v40  ;;  %v2317_v61 = vpop.permute.xlu1 %2316 }
 0xbee   :  { %3813 = vmatmul.mubr.msk.f32.vlgmr.msra.gmra.mrb[14].mxu0 %vm307_vm3, %v1995_v51 }
 0xbef   :  { %v3993_v52 = vpop.eup %3992  ;;  %3821 = vmatpush3.msk.msra.mxu0 %vm821_vm4, %v2151_v48 }
 0xbf0   :  { %v1997_v54 = vmul.f32 %v3993_v52, %v3989_v42  ;;  %3830 = vmatprep.subr.mxu0 %v4119_v8  ;;  %v2659_v15 = vpop.permute.xlu1 %2658 }
 0xbf2   :  { %3818 = vmatmul.mubr.msk.f32.vlgmr.msra.gmra.mrb[26].mxu1 %vm307_vm3, %v1997_v54  ;;  %v2987_v54 = vld [vmem:[#allocation7 + $0x18] sm:$0xf] }
 0xbf3   :  { %3826 = vmatpush3.xpose.msk.msra.mxu1 %vm153_vm2, %v2241_v53  ;;  %3827 = vmatprep.mubr.msk.f32.mxu1 %vm4120_vm1, %v4119_v8 }
 0xbf4   :  { %3835 = vmatprep.subr.mxu1 %v4119_v8 }
 0xbf6   :  { %3828 = vmatmul.mubr.msk.f32.vlgmr.msra.gmra.mrb[28].mxu1 %vm153_vm2, %v2239_v55 }
 0xbf7   :  { %3837 = vmatprep.mubr.msk.f32.mxu1 %vm4120_vm1, %v4119_v8 }
 0xcc1   :  { %v2070_v56 = vpop.f32.mrb[14].mxu0 }
 0xcc2   :  { %v3814_v57 = vpop.f32.mrb[15].mxu0  ;;  %3822 = vmatprep.mubr.msk.f32.mxu0 %vm153_vm2, %v2070_v56 }
 0xcc5   :  { %v2146_v58 = vpop.f32.mrb[26].mxu1 }
 0xcc6   :  { %v3819_v60 = vpop.f32.mrb[27].mxu1  ;;  %3823 = vmatmul.mubr.msk.f32.vlgmr.msra.gmra.mrb[6].mxu0 %vm153_vm2, %v2146_v58 }
 0xcc7   :  { %3831 = vmatpush3.xpose.msk.msra.mxu0 %vm153_vm2, %v2319_v59  ;;  %3832 = vmatprep.mubr.msk.f32.mxu0 %vm4120_vm1, %v4119_v8 }
 0xcc8   :  { %3840 = vmatprep.subr.mxu0 %v4119_v8 }
 0xcc9   :  { %v2312_v62 = vpop.f32.mrb[28].mxu1 }
 0xcca   :  { %v3829_v63 = vpop.f32.mrb[29].mxu1  ;;  %3833 = vmatmul.mubr.msk.f32.vlgmr.msra.gmra.mrb[16].mxu0 %vm153_vm2, %v2317_v61  ;;  %v2394_v0 = vsel %vm307_vm3, %v2312_v62, -inf }
 0xccb   :  { %2395 = vmax.xlane.f32.xlu0 %v2394_v0  ;;  %3842 = vmatprep.mubr.msk.f32.mxu0 %vm4120_vm1, %v4119_v8 }
 0xce1   :  { %2416 = vrot.lane.b32.xlu0 %v4230_v10, %s4137_s17 }
 0xce5   :  { %2656 = vrot.lane.b32.xlu0 %v4237_v12, %s4138_s19 }
 0xce9   :  { %2734 = vrot.lane.b32.xlu0 %v4245_v14, %s4138_s19 }
 0xd58   :  { %v2396_v1 = vpop.xlane.xlu0 %2395 }
 0xd59   :  { %v2400_v2 = vsub.f32 %v2312_v62, %v2396_v1 }
 0xd5b   :  { %v2402_v3 = vmul.f32 1.442695, %v2400_v2 }
 0xd5c   :  { %v2417_v4 = vpop.permute.xlu0 %2416 }
 0xd5d   :  { %3994 = vpow2.f32 %v2402_v3  ;;  %3836 = vmatpush3.msra.mxu1 %v2417_v4 }
 0xd5e   :  { %3850 = vmatprep.subr.mxu1 %v4119_v8 }
 0xd60   :  { %v2657_v19 = vpop.permute.xlu0 %2656 }
 0xd64   :  { %v2735_v21 = vpop.permute.xlu0 %2734 }
 0xd67   :  { %v3995_v5 = vpop.eup %3994 }
 0xd68   :  { %v2406_v6 = vsel %vm307_vm3, %v3995_v5, 0.0 }
 0xd69   :  { %2407 = vadd.xlane.f32.xlu1 %v2406_v6 }
 0xd7a   :  { %2736 = vrot.lane.b32.xlu1 %v4228_v9, %s4136_s16 }
 0xd9d   :  { %v2390_v7 = vpop.f32.mrb[16].mxu0 }
 0xd9e   :  { %v3834_v11 = vpop.f32.mrb[17].mxu0  ;;  %v2397_v13 = vsel %vm307_vm3, %v2390_v7, -inf }
 0xd9f   :  { %2398 = vmax.xlane.f32.xlu1 %v2397_v13 }
 0xdf6   :  { %v2408_v16 = vpop.xlane.xlu1 %2407 }
 0xdf7   :  { %3996 = vrcp.f32 %v2408_v16 }
 0xdfa   :  { %v2737_v20 = vpop.permute.xlu1 %2736 }
 0xe01   :  { %v3997_v17 = vpop.eup %3996 }
 0xe02   :  { %v2413_v18 = vmul.f32 %v3997_v17, %v3995_v5 }
 0xe04   :  { %3838 = vmatmul.mubr.msk.f32.vlgmr.msra.gmra.mrb[30].mxu1 %vm307_vm3, %v2413_v18 }
 0xe05   :  { %3851 = vmatpush3.xpose.msk.msra.mxu1 %vm153_vm2, %v2659_v15  ;;  %3852 = vmatprep.mubr.msk.f32.mxu1 %vm4120_vm1, %v4119_v8 }
 0xe06   :  { %3855 = vmatprep.subr.mxu1 %v4119_v8 }
 0xe08   :  { %3853 = vmatmul.mubr.msk.f32.vlgmr.msra.gmra.mrb[32].mxu1 %vm153_vm2, %v2657_v19 }
 0xe09   :  { %3856 = vmatpush3.xpose.msk.msra.mxu1 %vm153_vm2, %v2737_v20  ;;  %3857 = vmatprep.mubr.msk.f32.mxu1 %vm4120_vm1, %v4119_v8 }
 0xe0a   :  { %3865 = vmatprep.subr.mxu1 %v4119_v8 }
 0xe0c   :  { %3858 = vmatmul.mubr.msk.f32.vlgmr.msra.gmra.mrb[34].mxu1 %vm153_vm2, %v2735_v21 }
 0xe0d   :  { %3867 = vmatprep.mubr.msk.f32.mxu1 %vm4120_vm1, %v4119_v8 }
 0xe2c   :  { %v2399_v22 = vpop.xlane.xlu1 %2398 }
 0xe2d   :  { %v2401_v23 = vsub.f32 %v2390_v7, %v2399_v22 }
 0xe2f   :  { %v2404_v24 = vmul.f32 1.442695, %v2401_v23 }
 0xe31   :  { %3998 = vpow2.f32 %v2404_v24 }
 0xe3b   :  { %v3999_v25 = vpop.eup %3998 }
 0xe3c   :  { %v2409_v26 = vsel %vm307_vm3, %v3999_v25, 0.0 }
 0xe3d   :  { %2410 = vadd.xlane.f32.xlu0 %v2409_v26 }
 0xe53   :  { %2492 = vrot.lane.b32.xlu0 %v4228_v9, %s4137_s17 }
 0xe57   :  { %2910 = vrot.lane.b32.xlu0 %v4228_v9, %s4139_s20 }
 0xe5b   :  { %3076 = vrot.lane.b32.xlu0 %v4230_v10, %s4140_s21 }
 0xe5f   :  { %3154 = vrot.lane.b32.xlu0 %v4228_v9, %s4140_s21 }
 0xe63   :  { %3074 = vrot.lane.b32.xlu0 %v4237_v12, %s4141_s22 }
 0xeca   :  { %v2411_v27 = vpop.xlane.xlu0 %2410 }
 0xecb   :  { %4000 = vrcp.f32 %v2411_v27 }
 0xece   :  { %v2493_v28 = vpop.permute.xlu0 %2492 }
 0xecf   :  { %3841 = vmatpush3.msra.mxu0 %v2493_v28 }
 0xed0   :  { %3845 = vmatprep.subr.msk.mxu0 %vm821_vm4, %v2569_v39 }
 0xed2   :  { %v2911_v29 = vpop.permute.xlu0 %2910 }
 0xed3   :  { %3866 = vmatpush3.msra.mxu1 %v2911_v29 }
 0xed4   :  { %3875 = vmatprep.subr.mxu1 %v4119_v8 }
 0xed5   :  { %v4001_v30 = vpop.eup %4000 }
 0xed6   :  { %v2415_v31 = vmul.f32 %v4001_v30, %v3999_v25  ;;  %v3077_v56 = vpop.permute.xlu0 %3076 }
 0xed7   :  { %v2488_v32 = vpop.f32.mrb[30].mxu1 }
 0xed8   :  { %v3839_v33 = vpop.f32.mrb[31].mxu1  ;;  %3843 = vmatmul.mubr.msk.f32.vlgmr.msra.gmra.mrb[18].mxu0 %vm307_vm3, %v2415_v31 }
 0xed9   :  { %3847 = vmatprep.mubr.msk.f32.mxu0 %vm153_vm2, %v2488_v32  ;;  %3846 = vmatpush3.msk.msra.mxu0 %vm821_vm4, %v2569_v39 }
 0xeda   :  { %3860 = vmatprep.subr.mxu0 %v4119_v8  ;;  %v3155_v59 = vpop.permute.xlu0 %3154 }
 0xedb   :  { %v2730_v34 = vpop.f32.mrb[32].mxu1 }
 0xedc   :  { %v3854_v35 = vpop.f32.mrb[33].mxu1  ;;  %v2812_v12 = vsel %vm307_vm3, %v2730_v34, -inf }
 0xedd   :  { %2813 = vmax.xlane.f32.xlu1 %v2812_v12 }
 0xede   :  { %v3075_v61 = vpop.permute.xlu0 %3074 }
 0xedf   :  { %v2808_v36 = vpop.f32.mrb[34].mxu1 }
 0xee0   :  { %v3859_v37 = vpop.f32.mrb[35].mxu1  ;;  %v2815_v38 = vsel %vm307_vm3, %v2808_v36, -inf }
 0xee1   :  { %2816 = vmax.xlane.f32.xlu1 %v2815_v38 }
 0xf6a   :  { %v2814_v40 = vpop.xlane.xlu1 %2813 }
 0xf6b   :  { %v2818_v41 = vsub.f32 %v2730_v34, %v2814_v40 }
 0xf6d   :  { %v2820_v42 = vmul.f32 1.442695, %v2818_v41 }
 0xf6e   :  { %v2817_v43 = vpop.xlane.xlu1 %2816 }
 0xf6f   :  { %4002 = vpow2.f32 %v2820_v42  ;;  %v2819_v44 = vsub.f32 %v2808_v36, %v2817_v43 }
 0xf71   :  { %v2822_v45 = vmul.f32 1.442695, %v2819_v44 }
 0xf73   :  { %4004 = vpow2.f32 %v2822_v45 }
 0xf79   :  { %v4003_v46 = vpop.eup %4002 }
 0xf7a   :  { %v2824_v47 = vsel %vm307_vm3, %v4003_v46, 0.0 }
 0xf7b   :  { %2825 = vadd.xlane.f32.xlu1 %v2824_v47 }
 0xf7d   :  { %v4005_v48 = vpop.eup %4004 }
 0xf7e   :  { %v2827_v49 = vsel %vm307_vm3, %v4005_v48, 0.0 }
 0xf7f   :  { %2828 = vadd.xlane.f32.xlu1 %v2827_v49 }
 0xf90   :  { %2834 = vrot.lane.b32.xlu1 %v4230_v10, %s4139_s20 }
 0xf94   :  { %3152 = vrot.lane.b32.xlu1 %v4245_v14, %s4141_s22 }
 0xfab   :  { %v2564_v50 = vpop.f32.mrb[18].mxu0 }
 0xfac   :  { %v3844_v51 = vpop.f32.mrb[19].mxu0  ;;  %3848 = vmatmul.mubr.msk.f32.vlgmr.msra.gmra.mrb[6].mxu0 %vm153_vm2, %v2564_v50 }
 0xfad   :  { %3862 = vmatprep.mubr.msk.f32.mxu0 %vm4120_vm1, %v4119_v8 }
0x1008   :  { %v2826_v52 = vpop.xlane.xlu1 %2825 }
0x1009   :  { %4006 = vrcp.f32 %v2826_v52 }
0x100c   :  { %v2829_v53 = vpop.xlane.xlu1 %2828 }
0x100d   :  { %4008 = vrcp.f32 %v2829_v53 }
0x1010   :  { %v2835_v55 = vpop.permute.xlu1 %2834 }
0x1011   :  { %3861 = vmatpush3.msra.mxu0 %v2835_v55 }
0x1012   :  { %3870 = vmatprep.subr.msk.mxu0 %vm821_vm4, %v2987_v54 }
0x1013   :  { %v4007_v57 = vpop.eup %4006 }
0x1014   :  { %v2831_v58 = vmul.f32 %v4007_v57, %v4003_v46  ;;  %v3153_v2 = vpop.permute.xlu1 %3152 }
0x1016   :  { %3863 = vmatmul.mubr.msk.f32.vlgmr.msra.gmra.mrb[20].mxu0 %vm307_vm3, %v2831_v58 }
0x1017   :  { %v4009_v14 = vpop.eup %4008  ;;  %3871 = vmatpush3.msk.msra.mxu0 %vm821_vm4, %v2987_v54 }
0x1018   :  { %v2833_v60 = vmul.f32 %v4009_v14, %v4005_v48  ;;  %3880 = vmatprep.subr.mxu0 %v4119_v8 }
0x101a   :  { %3868 = vmatmul.mubr.msk.f32.vlgmr.msra.gmra.mrb[36].mxu1 %vm307_vm3, %v2833_v60 }
0x101b   :  { %3876 = vmatpush3.xpose.msk.msra.mxu1 %vm153_vm2, %v3077_v56  ;;  %3877 = vmatprep.mubr.msk.f32.mxu1 %vm4120_vm1, %v4119_v8 }
0x101c   :  { %3885 = vmatprep.subr.mxu1 %v4119_v8 }
0x101e   :  { %3878 = vmatmul.mubr.msk.f32.vlgmr.msra.gmra.mrb[38].mxu1 %vm153_vm2, %v3075_v61 }
0x101f   :  { %3887 = vmatprep.mubr.msk.f32.mxu1 %vm4120_vm1, %v4119_v8 }
0x10e9   :  { %v2906_v62 = vpop.f32.mrb[20].mxu0 }
0x10ea   :  { %v3864_v63 = vpop.f32.mrb[21].mxu0  ;;  %3872 = vmatprep.mubr.msk.f32.mxu0 %vm153_vm2, %v2906_v62 }
0x10ed   :  { %v2982_v0 = vpop.f32.mrb[36].mxu1 }
0x10ee   :  { %v3869_v1 = vpop.f32.mrb[37].mxu1  ;;  %3873 = vmatmul.mubr.msk.f32.vlgmr.msra.gmra.mrb[6].mxu0 %vm153_vm2, %v2982_v0 }
0x10ef   :  { %3881 = vmatpush3.xpose.msk.msra.mxu0 %vm153_vm2, %v3155_v59  ;;  %3882 = vmatprep.mubr.msk.f32.mxu0 %vm4120_vm1, %v4119_v8 }
0x10f0   :  { %3890 = vmatprep.subr.mxu0 %v4119_v8 }
0x10f1   :  { %v3148_v3 = vpop.f32.mrb[38].mxu1 }
0x10f2   :  { %v3879_v4 = vpop.f32.mrb[39].mxu1  ;;  %3883 = vmatmul.mubr.msk.f32.vlgmr.msra.gmra.mrb[22].mxu0 %vm153_vm2, %v3153_v2  ;;  %v3230_v5 = vsel %vm307_vm3, %v3148_v3, -inf }
0x10f3   :  { %3231 = vmax.xlane.f32.xlu0 %v3230_v5  ;;  %3892 = vmatprep.mubr.msk.f32.mxu0 %vm4120_vm1, %v4119_v8 }
0x1180   :  { %v3232_v6 = vpop.xlane.xlu0 %3231 }
0x1181   :  { %v3236_v7 = vsub.f32 %v3148_v3, %v3232_v6 }
0x1183   :  { %v3238_v11 = vmul.f32 1.442695, %v3236_v7 }
0x1185   :  { %4010 = vpow2.f32 %v3238_v11 }
0x118f   :  { %v4011_v13 = vpop.eup %4010 }
0x1190   :  { %v3242_v15 = vsel %vm307_vm3, %v4011_v13, 0.0 }
0x1191   :  { %3243 = vadd.xlane.f32.xlu0 %v3242_v15 }
0x11c5   :  { %v3226_v16 = vpop.f32.mrb[22].mxu0 }
0x11c6   :  { %v3884_v17 = vpop.f32.mrb[23].mxu0  ;;  %v3233_v18 = vsel %vm307_vm3, %v3226_v16, -inf }
0x11c7   :  { %3234 = vmax.xlane.f32.xlu1 %v3233_v18 }
0x11d8   :  { %3252 = vrot.lane.b32.xlu1 %v4230_v10, %s4142_s23  ;;  %v3405_v10 = vld [vmem:[#allocation7 + $0x1c] sm:$0xf] }
0x121e   :  { %v3244_v19 = vpop.xlane.xlu0 %3243 }
0x121f   :  { %4012 = vrcp.f32 %v3244_v19 }
0x1229   :  { %v4013_v8 = vpop.eup %4012 }
0x122a   :  { %v3249_v23 = vmul.f32 %v4013_v8, %v4011_v13 }
0x1254   :  { %v3235_v20 = vpop.xlane.xlu1 %3234 }
0x1255   :  { %v3237_v21 = vsub.f32 %v3226_v16, %v3235_v20 }
0x1257   :  { %v3240_v22 = vmul.f32 1.442695, %v3237_v21 }
0x1258   :  { %v3253_v24 = vpop.permute.xlu1 %3252 }
0x1259   :  { %4014 = vpow2.f32 %v3240_v22  ;;  %3886 = vmatpush3.msra.mxu1 %v3253_v24 }
0x125a   :  { %3888 = vmatmul.mubr.msk.f32.vlgmr.msra.gmra.mrb[40].mxu1 %vm307_vm3, %v3249_v23 }
0x1263   :  { %v4015_v25 = vpop.eup %4014 }
0x1264   :  { %v3245_v26 = vsel %vm307_vm3, %v4015_v25, 0.0 }
0x1265   :  { %3246 = vadd.xlane.f32.xlu0 %v3245_v26 }
0x127b   :  { %3328 = vrot.lane.b32.xlu0 %v4228_v9, %s4142_s23  ;;  %v3594_v9 = vld [vmem:[%s4539_s3] ss:$0 sm:$0xff] }
0x12f2   :  { %v3247_v27 = vpop.xlane.xlu0 %3246 }
0x12f3   :  { %4016 = vrcp.f32 %v3247_v27 }
0x12f6   :  { %v3329_v28 = vpop.permute.xlu0 %3328 }
0x12f7   :  { %3891 = vmatpush3.msra.mxu0 %v3329_v28 }
0x12f8   :  { %3895 = vmatprep.subr.msk.mxu0 %vm821_vm4, %v3405_v10 }
0x12fd   :  { %v4017_v29 = vpop.eup %4016 }
0x12fe   :  { %v3251_v30 = vmul.f32 %v4017_v29, %v4015_v25 }
0x1300   :  { %3893 = vmatmul.mubr.msk.f32.vlgmr.msra.gmra.mrb[24].mxu0 %vm307_vm3, %v3251_v30 }
0x1301   :  { %3896 = vmatpush3.msk.msra.mxu0 %vm821_vm4, %v3405_v10 }
0x132d   :  { %v3324_v31 = vpop.f32.mrb[40].mxu1 }
0x132e   :  { %v3889_v32 = vpop.f32.mrb[41].mxu1  ;;  %3897 = vmatprep.mubr.msk.f32.mxu0 %vm153_vm2, %v3324_v31 }
0x13d3   :  { %v3400_v33 = vpop.f32.mrb[24].mxu0 }
0x13d4   :  { %v3894_v34 = vpop.f32.mrb[25].mxu0  ;;  %3898 = vmatmul.mubr.msk.f32.vlgmr.msra.gmra.mrb[6].mxu0 %vm153_vm2, %v3400_v33 }
0x14a7   :  { %v3899_v35 = vpop.f32.mrb[6].mxu0 }
0x14a8   :  { %v3499_v12 = vadd.f32 %v3899_v35, %v3594_v9  ;;  %v3481_v36 = vpop.f32.mrb[7].mxu0 }
0x14a9   :  { %v3498_v37 = vadd.f32 %v3594_v9, %v3481_v36 }
0x14aa   :  { %3501 = vst.msk [vmem:[#allocation8 + $0x8] sm:$0xff] %vm66_vm0, %v3499_v12 }
0x14ab   :  { %3500 = vst.msk [vmem:[#allocation8] sm:$0xff] %vm66_vm0, %v3498_v37 }
0x14ac   :  { %4095 = shalt.err (!%p4092_p0)
}
0x14ad   :  { %s4096_s29 = scalar_lea.hbm %s4540_s4, 256 }
0x14ae   :  { %p4097_p1 = scmp.ne.s32.totalorder %s4540_s4, %s4096_s29  ;;  %p4100_p2 = scmp.lt.u32.totalorder %s4096_s29, %s4540_s4 }
0x14b0   :  { %p4102_p3 = pnand %p4100_p2, %p4097_p1 }
0x14b2   :  { %4105 = shalt.err (!%p4102_p3)
}
0x14b3   :  { %3513 = dma.vmem_to_hbm [thread:$0]  %s3508_s25, 256, %s4540_s4, [#allocation4], %s4114_s27, %s4114_s27, %s4115_s28  }
0x14b4   :  { %4110 = dma.done.wait [#allocation4], 256  }
0x14b5   :  { %4111 = vsyncadd [#allocation4], 4294967040 }
0x14b6   :  { %3517 = vsyncpa [#allocation3], 1 }
0x14b7   :  { %3518 = vsyncpa [#allocation6], 1 }
0x14b8   :  { %3519 = vsyncpa [#allocation4], 1 }

</bundles_post_ra>
